<compile_context>
chip_gen: v6e
topology: v6e:2x2x1
jax: 0.10.0
libtpu: 0.0.40
codegen_flags: <defaults>
</compile_context>

<pallas_src>
import jax
import jax.numpy as jnp
from jax.experimental import pallas as pl
from jax.experimental.pallas import tpu as pltpu


def _add_bias_kernel(x_ref, c_ref, o_ref):
    # x_ref: (TR, S) tile of the flattened input
    # c_ref: (1, S)  broadcast constant row (block index never changes -> stays resident)
    # o_ref: (TR, S) output tile
    o_ref[...] = x_ref[...] + c_ref[...]


def _choose_row_tile(rows, lane, dtype_bytes=4, vmem_budget=12 * 1024 * 1024):
    """Pick the largest row tile that (a) divides `rows`, (b) keeps the
    double-buffered input+output blocks under `vmem_budget`, and (c) prefers
    an even grid count so v7x's two TensorCores split the grid evenly."""
    best = None
    for tr in (4608, 2304, 1536, 1152, 768, 576, 512, 384, 256, 128, 64, 32, 16, 8):
        if tr > rows or rows % tr != 0:
            continue
        # 2 buffers for the input block + 2 for the output block
        needed = 2 * 2 * tr * lane * dtype_bytes
        if needed > vmem_budget:
            continue
        if best is None:
            best = tr
        if (rows // tr) % 2 == 0:
            return tr
    return best if best is not None else rows


def broadcast_add(x, const):
    """x: [B, H, S, S] float32, const: [1, 1, 1, S] float32 -> x + const."""
    B, H, S1, S2 = x.shape
    rows = B * H * S1
    x2d = x.reshape(rows, S2)
    c2d = const.reshape(1, S2)

    TR = _choose_row_tile(rows, S2, dtype_bytes=x.dtype.itemsize)
    assert rows % TR == 0  # guaranteed by _choose_row_tile

    out2d = pl.pallas_call(
        _add_bias_kernel,
        out_shape=jax.ShapeDtypeStruct((rows, S2), x.dtype),
        grid_spec=pltpu.PrefetchScalarGridSpec(
            num_scalar_prefetch=0,
            grid=(rows // TR,),
            in_specs=[
                pl.BlockSpec((TR, S2), lambda i: (i, 0)),
                pl.BlockSpec((1, S2), lambda i: (0, 0)),
            ],
            out_specs=pl.BlockSpec((TR, S2), lambda i: (i, 0)),
        ),
        compiler_params=pltpu.CompilerParams(
            dimension_semantics=("parallel",),
        ),
    )(x2d, c2d)

    return out2d.reshape(B, H, S1, S2)


if __name__ == "__main__":
    key = jax.random.PRNGKey(0)
    kx, kc = jax.random.split(key)

    # Module shapes: x161 ~ [1, 12, 384, 384], constant ~ [1, 1, 1, 384]
    x161 = jax.random.normal(kx, (1, 12, 384, 384), dtype=jnp.float32)
    # torch.rand -> uniform [0, 1)
    tensor_constant20 = jax.random.uniform(kc, (1, 1, 1, 384), dtype=jnp.float32)

    out = broadcast_add(x161, tensor_constant20)
    out = jax.block_until_ready(out)

    # correctness check against plain JAX broadcast add
    ref = x161 + tensor_constant20
    assert out.shape == (1, 12, 384, 384)
    assert jnp.allclose(out, ref, atol=1e-6, rtol=1e-6)

    print("KERNEL_OK")
</pallas_src>

<mosaic_0001>
module attributes {stable_mosaic.version = 11 : i64} {
  func.func @_add_bias_kernel(%arg0: i32, %arg1: memref<1152x384xf32, #tpu.memory_space<vmem>>, %arg2: memref<1x384xf32, #tpu.memory_space<vmem>>, %arg3: memref<1152x384xf32, #tpu.memory_space<vmem>>) attributes {dimension_semantics = [#tpu.dimension_semantics<parallel>], iteration_bounds = array<i64: 4>, scalar_prefetch = 0 : i64, scratch_operands = 0 : i64, tpu.core_type = #tpu.core_type<tc>, window_params = [{transform_indices = @transform_0, window_bounds = array<i64: 1152, 384>}, {pipeline_mode = #tpu.pipeline_mode<synchronous>, transform_indices = @transform_1, window_bounds = array<i64: 1, 384>}, {transform_indices = @transform_2, window_bounds = array<i64: 1152, 384>}]} {
    %c0 = arith.constant 0 : index
    %c0_0 = arith.constant 0 : index
    %0 = vector.load %arg1[%c0, %c0_0] : memref<1152x384xf32, #tpu.memory_space<vmem>>, vector<1152x384xf32>
    %c0_1 = arith.constant 0 : index
    %c0_2 = arith.constant 0 : index
    %1 = vector.load %arg2[%c0_1, %c0_2] : memref<1x384xf32, #tpu.memory_space<vmem>>, vector<1x384xf32>
    %2 = vector.broadcast %1 : vector<1x384xf32> to vector<1152x384xf32>
    %3 = arith.addf %0, %2 : vector<1152x384xf32>
    %c0_3 = arith.constant 0 : index
    %c0_4 = arith.constant 0 : index
    %4 = vector.load %arg3[%c0_3, %c0_4] : memref<1152x384xf32, #tpu.memory_space<vmem>>, vector<1152x384xf32>
    tpu.vector_store %arg3[%c0_3, %c0_4], %3 {strides = array<i32>} : memref<1152x384xf32, #tpu.memory_space<vmem>>, vector<1152x384xf32>,
    return
  }
  func.func @transform_0(%arg0: i32) -> (i32, i32) {
    %c0_i32 = arith.constant 0 : i32
    %c0_i32_0 = arith.constant 0 : i32
    return %arg0, %c0_i32 : i32, i32
  }
  func.func @transform_1(%arg0: i32) -> (i32, i32) {
    %c0_i32 = arith.constant 0 : i32
    %c0_i32_0 = arith.constant 0 : i32
    %c0_i32_1 = arith.constant 0 : i32
    return %c0_i32, %c0_i32_0 : i32, i32
  }
  func.func @transform_2(%arg0: i32) -> (i32, i32) {
    %c0_i32 = arith.constant 0 : i32
    %c0_i32_0 = arith.constant 0 : i32
    return %arg0, %c0_i32 : i32, i32
  }
}

</mosaic_0001>

<bundles_post_ra>
// kernel: tpu_custom_call.1
= control target key start
LH: loop header
LB: loop body
LE: loop exit
PB: predicated region body
PF: predicated region fallthrough
CT: control target
= control target key end

     0   :  { %7 = vsyncpa [#allocation3], 0  ;;  %s3304_s0 = inlined_call_operand.hbm [shape: f32[4608,384], index: 0, kind: input, shape index: {}]   ;;  %s3305_s1 = inlined_call_operand.hbm [shape: f32[1,384], index: 1, kind: input, shape index: {}]   ;;  %s3306_s2 = inlined_call_operand.hbm [shape: f32[4608,384], index: 2, kind: output, shape index: {}]  }
   0x1   :  { %9 = vsyncpa [#allocation3 + $0x1], 0 }
   0x2   :  { %10 = vsyncpa [#allocation6], 0 }
   0x3   :  { %11 = vsyncpa [#allocation4], 0 }
   0x4   :  { %13 = vsyncpa [#allocation4 + $0x1], 0  ;;  %s1812_s9 = smov 0   ;;  %s1814_s10 = smov 0  }
   0x5   :  { %s1816_s11 = smov 0   ;;  %s1818_s12 = smov 0  }
   0x6 LB: > { %s1833_s13 = sadd.s32 4294967295, %s1788_s12   ;;  %s1589_s14 = sadd.s32 4294967294, %s1788_s12   ;;  %s1788_s12 = sphi %s1818_s12, %s3327_s12   ;;  %s1784_s11 = sphi %s1816_s11, %s3326_s11   ;;  %s1780_s10 = sphi %s1814_s10, %s3325_s10   ;;  %s1776_s9 = sphi %s1812_s9, %s3324_s9  }
   0x7   : > { %s1837_s15 = sadd.s32 1, %s1788_s12   ;;  %s26_s16 = sadd.s32 1, %s1784_s11 }
   0x8   : > { %s23_s17 = ssub.s32 %s1788_s12, %s1837_s15  ;;  %p33_p0 = scmp.ne.s32.totalorder %s1784_s11, %s1780_s10 }
   0x9   : > { %p24_p1 = scmp.eq.s32.totalorder %s23_s17, 0  ;;  %p34_p2 = scmp.eq.s32.totalorder %s1788_s12, 0 }
   0xa   : > { %p39_p3 = scmp.ne.s32.totalorder %s1780_s10, %s1776_s9  ;;  %p3308_p4 = scmp.eq.s32.totalorder %s1833_s13, 0 }
   0xb   : > { %s1849_s18 = scalar_select %p24_p1, %s1784_s11, %s26_s16  }
   0xc   : > { %p1851_p5 = por %p34_p2, %p33_p0  ;;  %p1857_p6 = por %p3308_p4, %p39_p3 }
   0xd   : > { %p84_p7 = scmp.eq.s32.totalorder %s1833_s13, 3  ;;  %p90_p8 = scmp.eq.s32.totalorder %s1589_s14, 3 }
   0xe   : > { %s3312_s20 = scalar_select %p1857_p6, 1, 0 }
   0xf   : > { %p1590_p9 = scmp.ge.s32.totalorder %s1788_s12, 1  ;;  %p97_p10 = scmp.lt.s32.totalorder %s1788_s12, 5 }
  0x10   : > { %p1864_p11 = por %p84_p7, %p33_p0  ;;  %p1868_p12 = por %p90_p8, %p39_p3 }
  0x11   : > { %p1872_p13 = pnand %p1590_p9, %p97_p10  ;;  %s1790_s24 = smov [#allocation5]  }
  0x12   : > { %s3313_s21 = scalar_select %p1864_p11, 1, 0 }
  0x13   : > { %s3314_s22 = scalar_select %p1868_p12, 1, 0 }
  0x14   : > { %s3315_s23 = scalar_select %p1872_p13, 1, 0 }
  0x15   : > { %p1611_p1 = pneg %p1872_p13  ;;  %s110_s25 = sshll.u32 %s1790_s24, 4  ;;  %s111_s25 = int_to_ptr.vmem [resolvable:$true] %s110_s25 }
  0x16   : > { %p1624_p2 = scmp.lt.s32.totalorder %s1788_s12, 4  ;;  %s121_s28 = sand.u32 1, %s1784_s11  }
  0x17   : > { %p1881_p0 = pnand %p1611_p1, %p3308_p4  ;;  %s1677_s29 = scalar_lea.vmem %s111_s25, 48 }
  0x18   : > { %p1887_p3 = pnand %p1624_p2, %p1851_p5  ;;  %p1678_p8 = scmp.ne.s32.totalorder %s111_s25, %s1677_s29 }
  0x19   : > { %p1668_p7 = pneg %p1881_p0  ;;  %s1684_s30 = scalar_lea.vmem %s111_s25, 64 }
  0x1a   : > { %p1685_p12 = scmp.lt.s32.totalorder %s111_s25, %s111_s25  ;;  %p1686_p11 = scmp.lt.s32.totalorder %s1684_s30, %s1677_s29 }
  0x1b   : > { %p1680_p9 = pnand %p1678_p8, %p1668_p7 }
  0x1c   : > { %p1687_p1 = por %p1686_p11, %p1685_p12 }
  0x1d   : > { %p1681_p10 = pneg %p1680_p9 }
  0x1f   : > { %p1688_p4 = pnand %p1687_p1, %p1681_p10 }
  0x21   : > { %1691 = shalt.err (!%p1688_p4)
}
  0x22   : > { %1614 = dma.hbm_to_vmem [thread:$0]  (!%p1881_p0), %s3305_s1, 48, %s111_s25, [#allocation6]  }
  0x23   : > { %s1599_s5 = smul.u32 3456, %s121_s28  ;;  %s1907_s19 = scalar_lea.sflag [#allocation3], %s121_s28 }
  0x24   : > { %s1625_s6 = smul.u32 55296, %s1788_s12  ;;  %p1694_p5 = pneg %p1887_p3 }
  0x25   : > { %s125_s16 = scalar_lea.vmem [#allocation2], %s1599_s5  ;;  %s1697_s29 = scalar_lea.hbm %s3304_s0, 221184 }
  0x26   : > { %s1903_s14 = scalar_lea.hbm %s3304_s0, %s1625_s6  ;;  %s133_s17 = sshll.u32 %s125_s16, 4  ;;  %s1905_s17 = int_to_ptr.vmem [resolvable:$true] %s133_s17 }
  0x27   : > { %s1692_s24 = scalar_lea.hbm %s1903_s14, 55296  ;;  %p1698_p2 = scmp.lt.s32.totalorder %s1903_s14, %s3304_s0 }
  0x28   : > { %p1693_p4 = scmp.ne.s32.totalorder %s1903_s14, %s1692_s24  ;;  %p1699_p0 = scmp.lt.s32.totalorder %s1697_s29, %s1692_s24 }
  0x2a   : > { %p1695_p11 = pnand %p1694_p5, %p1693_p4  ;;  %p1700_p7 = por %p1699_p0, %p1698_p2 }
  0x2c   : > { %p1696_p12 = pneg %p1695_p11 }
  0x2e   : > { %p1701_p8 = pnand %p1700_p7, %p1696_p12 }
  0x30   : > { %1704 = shalt.err (!%p1701_p8)
}
  0x31   : > { %s1705_s28 = scalar_lea.vmem %s1905_s17, 55296  ;;  %s1791_s4 = smov [#allocation2]  }
  0x32   : > { %p1706_p9 = scmp.ne.s32.totalorder %s1905_s17, %s1705_s28  ;;  %s1710_s5 = sshll.u32 %s1791_s4, 4  ;;  %s1711_s5 = int_to_ptr.vmem [resolvable:$false] %s1710_s5 }
  0x33   : > { %s1712_s6 = scalar_lea.vmem %s1711_s5, 110592  ;;  %p1713_p4 = scmp.lt.s32.totalorder %s1905_s17, %s1711_s5 }
  0x34   : > { %p1708_p10 = pnand %p1706_p9, %p1694_p5  ;;  %p1714_p11 = scmp.lt.s32.totalorder %s1712_s6, %s1705_s28 }
  0x36   : > { %p1709_p1 = pneg %p1708_p10  ;;  %p1715_p6 = por %p1714_p11, %p1713_p4 }
  0x38   : > { %p1716_p13 = pnand %p1715_p6, %p1709_p1 }
  0x3a   : > { %1719 = shalt.err (!%p1716_p13)
}
  0x3b   : > { %s1792_s7 = smov 384   ;;  %s1793_s8 = smov 24  }
  0x3c   : > { %1618 = dma.hbm_to_vmem [thread:$0]  (!%p1887_p3), %s1903_s14, 55296, %s1905_s17, %s1907_s19, %s1792_s7, %s1792_s7, %s1793_s8  }
  0x3d   : > { %p3318_p5 = scmp.ne.s32.totalorder %s3315_s23, 0 }
  0x3e   : > { %s1931_s16 = sand.u32 (!%p3318_p5), 1, %s1780_s10   ;;  %p3319_p6 = scmp.ne.s32.totalorder (!%p3318_p5), %s3312_s20, 0 }
  0x3f   : > { %145 = sbr.rel (%p3318_p5) target bundleno = 311 (0x137), region = 28  ;;  %s148_s25 = scalar_lea.sflag (!%p3318_p5), [#allocation3], %s1931_s16 }
  0x40   : > { %s1601_s24 = smul.u32 (!%p3318_p5), 3456, %s1931_s16 }
  0x42   : > { %s1937_s26 = scalar_lea.vmem (!%p3318_p5), [#allocation2], %s1601_s24 }
  0x44   : > { %1763 = dma.done.wait (%p3319_p6), %s148_s25, 55296  }
  0x45   : > { %1765 = vsyncadd (%p3319_p6), %s148_s25, 4294912000  ;;  %p3320_p13 = scmp.eq.s32.totalorder %s1833_s13, 0 }
  0x47   : > { %1767 = dma.done.wait (%p3320_p13), [#allocation6], 48   ;;  %p3321_p3 = pmov %p3320_p13 }
  0x48   : > { %v612_v0 = vlaneseq  ;;  %v178_v5 = vld [vmem:[%s1937_s26] sm:$0xff]  ;;  %v179_v7 = vld [vmem:[%s1937_s26 + $0x8] sm:$0xff]  ;;  %v180_v10 = vld [vmem:[%s1937_s26 + $0x10] sm:$0xff]  ;;  %s1977_s20 = scalar_lea.vmem [#allocation7], %s1601_s24  ;;  %s1627_s23 = smul.u32 55296, %s1833_s13 }
  0x49   : > { %1769 = vsyncadd (%p3321_p3), [#allocation6], 4294967248  ;;  %v610_v6 = vld [vmem:[#allocation5] sm:$0x7]  ;;  %v181_v12 = vld [vmem:[%s1937_s26 + $0x18] sm:$0xff]  ;;  %s1506_s27 = sshll.u32 %s1977_s20, 4  ;;  %s3254_s27 = int_to_ptr.vmem [resolvable:$true] %s1506_s27 }
  0x4a   : > { %v613_v1 = vshrl.u32 %v612_v0, 7  ;;  %v182_v13 = vld [vmem:[%s1937_s26 + $0x20] sm:$0xff]  ;;  %v183_v14 = vld [vmem:[%s1937_s26 + $0x28] sm:$0xff]  ;;  %v184_v15 = vld [vmem:[%s1937_s26 + $0x30] sm:$0xff]  ;;  %s3252_s19 = scalar_lea.hbm %s3306_s2, %s1627_s23  ;;  %s1492_s13 = scalar_lea.sflag [#allocation4], %s1931_s16 }
  0x4b   : > { %v185_v16 = vld [vmem:[%s1937_s26 + $0x38] sm:$0xff]  ;;  %v186_v21 = vld [vmem:[%s1937_s26 + $0x40] sm:$0xff]  ;;  %v187_v22 = vld [vmem:[%s1937_s26 + $0x48] sm:$0xff]  ;;  %s1720_s29 = scalar_lea.vmem %s3254_s27, 55296  ;;  %p3322_p2 = scmp.ne.s32.totalorder %s3313_s21, 0 }
  0x4c   : > { %v614_v2 = vsub.s32 0, %v613_v1  ;;  %v618_v3 = vsub.s32 1, %v613_v1  ;;  %v622_v4 = vsub.s32 2, %v613_v1  ;;  %v188_v23 = vld [vmem:[%s1937_s26 + $0x50] sm:$0xff]  ;;  %v189_v28 = vld [vmem:[%s1937_s26 + $0x58] sm:$0xff]  ;;  %v190_v29 = vld [vmem:[%s1937_s26 + $0x60] sm:$0xff]  ;;  %p1721_p12 = scmp.ne.s32.totalorder %s3254_s27, %s1720_s29 }
  0x4d   : > { %v191_v30 = vld [vmem:[%s1937_s26 + $0x68] sm:$0xff]  ;;  %v192_v35 = vld [vmem:[%s1937_s26 + $0x70] sm:$0xff]  ;;  %v193_v36 = vld [vmem:[%s1937_s26 + $0x78] sm:$0xff]  ;;  %s1794_s30 = smov [#allocation7]  }
  0x4e   : > { %v1949_v8 = vrot.slane %v610_v6, %v614_v2  ;;  %v1951_v9 = vrot.slane %v610_v6, %v618_v3  ;;  %v1954_v11 = vrot.slane %v610_v6, %v622_v4  ;;  %v194_v37 = vld [vmem:[%s1937_s26 + $0x80] sm:$0xff]  ;;  %v195_v42 = vld [vmem:[%s1937_s26 + $0x88] sm:$0xff]  ;;  %v196_v43 = vld [vmem:[%s1937_s26 + $0x90] sm:$0xff]  ;;  %p1722_p0 = pnand %p1721_p12, %p3322_p2  ;;  %s1724_s3 = sshll.u32 %s1794_s30, 4  ;;  %s1725_s3 = int_to_ptr.vmem [resolvable:$false] %s1724_s3 }
  0x4f   : > { %v197_v44 = vld [vmem:[%s1937_s26 + $0x98] sm:$0xff]  ;;  %v198_v49 = vld [vmem:[%s1937_s26 + $0xa0] sm:$0xff]  ;;  %v199_v50 = vld [vmem:[%s1937_s26 + $0xa8] sm:$0xff]  ;;  %s1726_s28 = scalar_lea.vmem %s1725_s3, 110592  ;;  %p1727_p8 = scmp.lt.s32.totalorder %s3254_s27, %s1725_s3 }
  0x50   : > { %v627_v17 = vadd.f32 %v1949_v8, %v178_v5  ;;  %v628_v18 = vadd.f32 %v1951_v9, %v179_v7  ;;  %v629_v19 = vadd.f32 %v1954_v11, %v180_v10  ;;  %v630_v20 = vadd.f32 %v1949_v8, %v181_v12  ;;  %v200_v51 = vld [vmem:[%s1937_s26 + $0xb0] sm:$0xff]  ;;  %v201_v55 = vld [vmem:[%s1937_s26 + $0xb8] sm:$0xff]  ;;  %v202_v56 = vld [vmem:[%s1937_s26 + $0xc0] sm:$0xff]  ;;  %p1723_p7 = pneg %p1722_p0  ;;  %p1728_p9 = scmp.lt.s32.totalorder %s1726_s28, %s1720_s29 }
  0x51   : > { %v631_v24 = vadd.f32 %v1951_v9, %v182_v13  ;;  %v632_v25 = vadd.f32 %v1954_v11, %v183_v14  ;;  %v633_v26 = vadd.f32 %v1949_v8, %v184_v15  ;;  %v634_v27 = vadd.f32 %v1951_v9, %v185_v16  ;;  %v203_v57 = vld [vmem:[%s1937_s26 + $0xc8] sm:$0xff]  ;;  %v204_v61 = vld [vmem:[%s1937_s26 + $0xd0] sm:$0xff]  ;;  %v205_v62 = vld [vmem:[%s1937_s26 + $0xd8] sm:$0xff] }
  0x52   : > { %1059 = vst [vmem:[%s1977_s20] sm:$0xff] %v627_v17  ;;  %1060 = vst [vmem:[%s1977_s20 + $0x8] sm:$0xff] %v628_v18  ;;  %v635_v31 = vadd.f32 %v1954_v11, %v186_v21  ;;  %v636_v32 = vadd.f32 %v1949_v8, %v187_v22  ;;  %v637_v33 = vadd.f32 %v1951_v9, %v188_v23  ;;  %v206_v63 = vld [vmem:[%s1937_s26 + $0xe0] sm:$0xff]  ;;  %v207_v3 = vld [vmem:[%s1937_s26 + $0xe8] sm:$0xff]  ;;  %p1729_p10 = por %p1728_p9, %p1727_p8 }
  0x53   : > { %1061 = vst [vmem:[%s1977_s20 + $0x10] sm:$0xff] %v629_v19  ;;  %1062 = vst [vmem:[%s1977_s20 + $0x18] sm:$0xff] %v630_v20  ;;  %v638_v34 = vadd.f32 %v1954_v11, %v189_v28  ;;  %v639_v38 = vadd.f32 %v1949_v8, %v190_v29  ;;  %v640_v39 = vadd.f32 %v1951_v9, %v191_v30  ;;  %v208_v4 = vld [vmem:[%s1937_s26 + $0xf0] sm:$0xff]  ;;  %v209_v5 = vld [vmem:[%s1937_s26 + $0xf8] sm:$0xff] }
  0x54   : > { %1063 = vst [vmem:[%s1977_s20 + $0x20] sm:$0xff] %v631_v24  ;;  %1064 = vst [vmem:[%s1977_s20 + $0x28] sm:$0xff] %v632_v25  ;;  %v641_v40 = vadd.f32 %v1954_v11, %v192_v35  ;;  %v642_v41 = vadd.f32 %v1949_v8, %v193_v36  ;;  %v643_v45 = vadd.f32 %v1951_v9, %v194_v37  ;;  %v210_v12 = vld [vmem:[%s1937_s26 + $0x100] sm:$0xff]  ;;  %v211_v13 = vld [vmem:[%s1937_s26 + $0x108] sm:$0xff]  ;;  %p1730_p1 = pnand %p1729_p10, %p1723_p7 }
  0x55   : > { %1065 = vst [vmem:[%s1977_s20 + $0x30] sm:$0xff] %v633_v26  ;;  %1066 = vst [vmem:[%s1977_s20 + $0x38] sm:$0xff] %v634_v27  ;;  %v644_v46 = vadd.f32 %v1954_v11, %v195_v42  ;;  %v645_v47 = vadd.f32 %v1949_v8, %v196_v43  ;;  %v646_v48 = vadd.f32 %v1951_v9, %v197_v44  ;;  %v212_v14 = vld [vmem:[%s1937_s26 + $0x110] sm:$0xff]  ;;  %v213_v18 = vld [vmem:[%s1937_s26 + $0x118] sm:$0xff] }
  0x56   : > { %1067 = vst [vmem:[%s1977_s20 + $0x40] sm:$0xff] %v635_v31  ;;  %1068 = vst [vmem:[%s1977_s20 + $0x48] sm:$0xff] %v636_v32  ;;  %v647_v52 = vadd.f32 %v1954_v11, %v198_v49  ;;  %v648_v53 = vadd.f32 %v1949_v8, %v199_v50  ;;  %v649_v54 = vadd.f32 %v1951_v9, %v200_v51  ;;  %v214_v19 = vld [vmem:[%s1937_s26 + $0x120] sm:$0xff]  ;;  %v215_v20 = vld [vmem:[%s1937_s26 + $0x128] sm:$0xff] }
  0x57   : > { %1069 = vst [vmem:[%s1977_s20 + $0x50] sm:$0xff] %v637_v33  ;;  %1070 = vst [vmem:[%s1977_s20 + $0x58] sm:$0xff] %v638_v34  ;;  %v650_v58 = vadd.f32 %v1954_v11, %v201_v55  ;;  %v651_v59 = vadd.f32 %v1949_v8, %v202_v56  ;;  %v652_v60 = vadd.f32 %v1951_v9, %v203_v57  ;;  %v216_v24 = vld [vmem:[%s1937_s26 + $0x130] sm:$0xff]  ;;  %v217_v25 = vld [vmem:[%s1937_s26 + $0x138] sm:$0xff] }
  0x58   : > { %1071 = vst [vmem:[%s1977_s20 + $0x60] sm:$0xff] %v639_v38  ;;  %1072 = vst [vmem:[%s1977_s20 + $0x68] sm:$0xff] %v640_v39  ;;  %v653_v0 = vadd.f32 %v1954_v11, %v204_v61  ;;  %v654_v1 = vadd.f32 %v1949_v8, %v205_v62  ;;  %v655_v2 = vadd.f32 %v1951_v9, %v206_v63  ;;  %v218_v26 = vld [vmem:[%s1937_s26 + $0x140] sm:$0xff]  ;;  %v219_v30 = vld [vmem:[%s1937_s26 + $0x148] sm:$0xff] }
  0x59   : > { %1073 = vst [vmem:[%s1977_s20 + $0x70] sm:$0xff] %v641_v40  ;;  %1074 = vst [vmem:[%s1977_s20 + $0x78] sm:$0xff] %v642_v41  ;;  %v656_v6 = vadd.f32 %v1954_v11, %v207_v3  ;;  %v657_v7 = vadd.f32 %v1949_v8, %v208_v4  ;;  %v658_v10 = vadd.f32 %v1951_v9, %v209_v5  ;;  %v220_v31 = vld [vmem:[%s1937_s26 + $0x150] sm:$0xff]  ;;  %v221_v32 = vld [vmem:[%s1937_s26 + $0x158] sm:$0xff] }
  0x5a   : > { %1075 = vst [vmem:[%s1977_s20 + $0x80] sm:$0xff] %v643_v45  ;;  %1076 = vst [vmem:[%s1977_s20 + $0x88] sm:$0xff] %v644_v46  ;;  %v659_v15 = vadd.f32 %v1954_v11, %v210_v12  ;;  %v660_v16 = vadd.f32 %v1949_v8, %v211_v13  ;;  %v661_v17 = vadd.f32 %v1951_v9, %v212_v14  ;;  %v222_v36 = vld [vmem:[%s1937_s26 + $0x160] sm:$0xff]  ;;  %v223_v37 = vld [vmem:[%s1937_s26 + $0x168] sm:$0xff] }
  0x5b   : > { %1077 = vst [vmem:[%s1977_s20 + $0x90] sm:$0xff] %v645_v47  ;;  %1078 = vst [vmem:[%s1977_s20 + $0x98] sm:$0xff] %v646_v48  ;;  %v662_v21 = vadd.f32 %v1954_v11, %v213_v18  ;;  %v663_v22 = vadd.f32 %v1949_v8, %v214_v19  ;;  %v664_v23 = vadd.f32 %v1951_v9, %v215_v20  ;;  %v224_v38 = vld [vmem:[%s1937_s26 + $0x170] sm:$0xff]  ;;  %v225_v42 = vld [vmem:[%s1937_s26 + $0x178] sm:$0xff] }
  0x5c   : > { %1079 = vst [vmem:[%s1977_s20 + $0xa0] sm:$0xff] %v647_v52  ;;  %1080 = vst [vmem:[%s1977_s20 + $0xa8] sm:$0xff] %v648_v53  ;;  %v665_v27 = vadd.f32 %v1954_v11, %v216_v24  ;;  %v666_v28 = vadd.f32 %v1949_v8, %v217_v25  ;;  %v667_v29 = vadd.f32 %v1951_v9, %v218_v26  ;;  %v226_v43 = vld [vmem:[%s1937_s26 + $0x180] sm:$0xff]  ;;  %v227_v44 = vld [vmem:[%s1937_s26 + $0x188] sm:$0xff] }
  0x5d   : > { %1081 = vst [vmem:[%s1977_s20 + $0xb0] sm:$0xff] %v649_v54  ;;  %1082 = vst [vmem:[%s1977_s20 + $0xb8] sm:$0xff] %v650_v58  ;;  %v668_v33 = vadd.f32 %v1954_v11, %v219_v30  ;;  %v669_v34 = vadd.f32 %v1949_v8, %v220_v31  ;;  %v670_v35 = vadd.f32 %v1951_v9, %v221_v32  ;;  %v228_v48 = vld [vmem:[%s1937_s26 + $0x190] sm:$0xff]  ;;  %v229_v49 = vld [vmem:[%s1937_s26 + $0x198] sm:$0xff] }
  0x5e   : > { %1083 = vst [vmem:[%s1977_s20 + $0xc0] sm:$0xff] %v651_v59  ;;  %1084 = vst [vmem:[%s1977_s20 + $0xc8] sm:$0xff] %v652_v60  ;;  %v671_v39 = vadd.f32 %v1954_v11, %v222_v36  ;;  %v672_v40 = vadd.f32 %v1949_v8, %v223_v37  ;;  %v673_v41 = vadd.f32 %v1951_v9, %v224_v38  ;;  %v230_v50 = vld [vmem:[%s1937_s26 + $0x1a0] sm:$0xff]  ;;  %v231_v54 = vld [vmem:[%s1937_s26 + $0x1a8] sm:$0xff] }
  0x5f   : > { %1085 = vst [vmem:[%s1977_s20 + $0xd0] sm:$0xff] %v653_v0  ;;  %1086 = vst [vmem:[%s1977_s20 + $0xd8] sm:$0xff] %v654_v1  ;;  %v674_v45 = vadd.f32 %v1954_v11, %v225_v42  ;;  %v675_v46 = vadd.f32 %v1949_v8, %v226_v43  ;;  %v676_v47 = vadd.f32 %v1951_v9, %v227_v44  ;;  %v232_v55 = vld [vmem:[%s1937_s26 + $0x1b0] sm:$0xff]  ;;  %v233_v56 = vld [vmem:[%s1937_s26 + $0x1b8] sm:$0xff] }
  0x60   : > { %1087 = vst [vmem:[%s1977_s20 + $0xe0] sm:$0xff] %v655_v2  ;;  %1088 = vst [vmem:[%s1977_s20 + $0xe8] sm:$0xff] %v656_v6  ;;  %v677_v51 = vadd.f32 %v1954_v11, %v228_v48  ;;  %v678_v52 = vadd.f32 %v1949_v8, %v229_v49  ;;  %v679_v53 = vadd.f32 %v1951_v9, %v230_v50  ;;  %v234_v60 = vld [vmem:[%s1937_s26 + $0x1c0] sm:$0xff]  ;;  %v235_v61 = vld [vmem:[%s1937_s26 + $0x1c8] sm:$0xff] }
  0x61   : > { %1089 = vst [vmem:[%s1977_s20 + $0xf0] sm:$0xff] %v657_v7  ;;  %1090 = vst [vmem:[%s1977_s20 + $0xf8] sm:$0xff] %v658_v10  ;;  %v680_v57 = vadd.f32 %v1954_v11, %v231_v54  ;;  %v681_v58 = vadd.f32 %v1949_v8, %v232_v55  ;;  %v682_v59 = vadd.f32 %v1951_v9, %v233_v56  ;;  %v236_v62 = vld [vmem:[%s1937_s26 + $0x1d0] sm:$0xff]  ;;  %v237_v2 = vld [vmem:[%s1937_s26 + $0x1d8] sm:$0xff] }
  0x62   : > { %1091 = vst [vmem:[%s1977_s20 + $0x100] sm:$0xff] %v659_v15  ;;  %1092 = vst [vmem:[%s1977_s20 + $0x108] sm:$0xff] %v660_v16  ;;  %v683_v63 = vadd.f32 %v1954_v11, %v234_v60  ;;  %v684_v0 = vadd.f32 %v1949_v8, %v235_v61  ;;  %v685_v1 = vadd.f32 %v1951_v9, %v236_v62  ;;  %v238_v3 = vld [vmem:[%s1937_s26 + $0x1e0] sm:$0xff]  ;;  %v239_v4 = vld [vmem:[%s1937_s26 + $0x1e8] sm:$0xff] }
  0x63   : > { %1093 = vst [vmem:[%s1977_s20 + $0x110] sm:$0xff] %v661_v17  ;;  %1094 = vst [vmem:[%s1977_s20 + $0x118] sm:$0xff] %v662_v21  ;;  %v686_v5 = vadd.f32 %v1954_v11, %v237_v2  ;;  %v687_v6 = vadd.f32 %v1949_v8, %v238_v3  ;;  %v688_v7 = vadd.f32 %v1951_v9, %v239_v4  ;;  %v240_v10 = vld [vmem:[%s1937_s26 + $0x1f0] sm:$0xff]  ;;  %v241_v12 = vld [vmem:[%s1937_s26 + $0x1f8] sm:$0xff] }
  0x64   : > { %1095 = vst [vmem:[%s1977_s20 + $0x120] sm:$0xff] %v663_v22  ;;  %1096 = vst [vmem:[%s1977_s20 + $0x128] sm:$0xff] %v664_v23  ;;  %v242_v13 = vld [vmem:[%s1937_s26 + $0x200] sm:$0xff]  ;;  %v689_v14 = vadd.f32 %v1954_v11, %v240_v10  ;;  %v690_v15 = vadd.f32 %v1949_v8, %v241_v12  ;;  %v243_v17 = vld [vmem:[%s1937_s26 + $0x208] sm:$0xff] }
  0x65   : > { %1097 = vst [vmem:[%s1977_s20 + $0x130] sm:$0xff] %v665_v27  ;;  %1098 = vst [vmem:[%s1977_s20 + $0x138] sm:$0xff] %v666_v28  ;;  %v691_v16 = vadd.f32 %v1951_v9, %v242_v13  ;;  %v244_v18 = vld [vmem:[%s1937_s26 + $0x210] sm:$0xff]  ;;  %v245_v19 = vld [vmem:[%s1937_s26 + $0x218] sm:$0xff]  ;;  %v692_v20 = vadd.f32 %v1954_v11, %v243_v17 }
  0x66   : > { %1099 = vst [vmem:[%s1977_s20 + $0x140] sm:$0xff] %v667_v29  ;;  %1100 = vst [vmem:[%s1977_s20 + $0x148] sm:$0xff] %v668_v33  ;;  %v693_v21 = vadd.f32 %v1949_v8, %v244_v18  ;;  %v694_v22 = vadd.f32 %v1951_v9, %v245_v19  ;;  %v246_v23 = vld [vmem:[%s1937_s26 + $0x220] sm:$0xff]  ;;  %v247_v24 = vld [vmem:[%s1937_s26 + $0x228] sm:$0xff] }
  0x67   : > { %1101 = vst [vmem:[%s1977_s20 + $0x150] sm:$0xff] %v669_v34  ;;  %1102 = vst [vmem:[%s1977_s20 + $0x158] sm:$0xff] %v670_v35  ;;  %v248_v25 = vld [vmem:[%s1937_s26 + $0x230] sm:$0xff]  ;;  %v695_v26 = vadd.f32 %v1954_v11, %v246_v23  ;;  %v696_v27 = vadd.f32 %v1949_v8, %v247_v24  ;;  %v249_v29 = vld [vmem:[%s1937_s26 + $0x238] sm:$0xff] }
  0x68   : > { %1103 = vst [vmem:[%s1977_s20 + $0x160] sm:$0xff] %v671_v39  ;;  %1104 = vst [vmem:[%s1977_s20 + $0x168] sm:$0xff] %v672_v40  ;;  %v697_v28 = vadd.f32 %v1951_v9, %v248_v25  ;;  %v250_v30 = vld [vmem:[%s1937_s26 + $0x240] sm:$0xff]  ;;  %v251_v31 = vld [vmem:[%s1937_s26 + $0x248] sm:$0xff]  ;;  %v698_v32 = vadd.f32 %v1954_v11, %v249_v29 }
  0x69   : > { %1105 = vst [vmem:[%s1977_s20 + $0x170] sm:$0xff] %v673_v41  ;;  %1106 = vst [vmem:[%s1977_s20 + $0x178] sm:$0xff] %v674_v45  ;;  %v699_v33 = vadd.f32 %v1949_v8, %v250_v30  ;;  %v700_v34 = vadd.f32 %v1951_v9, %v251_v31  ;;  %v252_v35 = vld [vmem:[%s1937_s26 + $0x250] sm:$0xff]  ;;  %v253_v36 = vld [vmem:[%s1937_s26 + $0x258] sm:$0xff] }
  0x6a   : > { %1107 = vst [vmem:[%s1977_s20 + $0x180] sm:$0xff] %v675_v46  ;;  %1108 = vst [vmem:[%s1977_s20 + $0x188] sm:$0xff] %v676_v47  ;;  %v254_v37 = vld [vmem:[%s1937_s26 + $0x260] sm:$0xff]  ;;  %v701_v38 = vadd.f32 %v1954_v11, %v252_v35  ;;  %v702_v39 = vadd.f32 %v1949_v8, %v253_v36  ;;  %v255_v41 = vld [vmem:[%s1937_s26 + $0x268] sm:$0xff] }
  0x6b   : > { %1109 = vst [vmem:[%s1977_s20 + $0x190] sm:$0xff] %v677_v51  ;;  %1110 = vst [vmem:[%s1977_s20 + $0x198] sm:$0xff] %v678_v52  ;;  %v703_v40 = vadd.f32 %v1951_v9, %v254_v37  ;;  %v256_v42 = vld [vmem:[%s1937_s26 + $0x270] sm:$0xff]  ;;  %v257_v43 = vld [vmem:[%s1937_s26 + $0x278] sm:$0xff]  ;;  %v704_v44 = vadd.f32 %v1954_v11, %v255_v41 }
  0x6c   : > { %1111 = vst [vmem:[%s1977_s20 + $0x1a0] sm:$0xff] %v679_v53  ;;  %1112 = vst [vmem:[%s1977_s20 + $0x1a8] sm:$0xff] %v680_v57  ;;  %v705_v45 = vadd.f32 %v1949_v8, %v256_v42  ;;  %v706_v46 = vadd.f32 %v1951_v9, %v257_v43  ;;  %v258_v47 = vld [vmem:[%s1937_s26 + $0x280] sm:$0xff]  ;;  %v259_v48 = vld [vmem:[%s1937_s26 + $0x288] sm:$0xff] }
  0x6d   : > { %1113 = vst [vmem:[%s1977_s20 + $0x1b0] sm:$0xff] %v681_v58  ;;  %1114 = vst [vmem:[%s1977_s20 + $0x1b8] sm:$0xff] %v682_v59  ;;  %v260_v49 = vld [vmem:[%s1937_s26 + $0x290] sm:$0xff]  ;;  %v707_v50 = vadd.f32 %v1954_v11, %v258_v47  ;;  %v708_v51 = vadd.f32 %v1949_v8, %v259_v48  ;;  %v261_v53 = vld [vmem:[%s1937_s26 + $0x298] sm:$0xff] }
  0x6e   : > { %1115 = vst [vmem:[%s1977_s20 + $0x1c0] sm:$0xff] %v683_v63  ;;  %1116 = vst [vmem:[%s1977_s20 + $0x1c8] sm:$0xff] %v684_v0  ;;  %v709_v52 = vadd.f32 %v1951_v9, %v260_v49  ;;  %v262_v54 = vld [vmem:[%s1937_s26 + $0x2a0] sm:$0xff]  ;;  %v263_v55 = vld [vmem:[%s1937_s26 + $0x2a8] sm:$0xff]  ;;  %v710_v56 = vadd.f32 %v1954_v11, %v261_v53 }
  0x6f   : > { %1117 = vst [vmem:[%s1977_s20 + $0x1d0] sm:$0xff] %v685_v1  ;;  %1118 = vst [vmem:[%s1977_s20 + $0x1d8] sm:$0xff] %v686_v5  ;;  %v711_v57 = vadd.f32 %v1949_v8, %v262_v54  ;;  %v712_v58 = vadd.f32 %v1951_v9, %v263_v55  ;;  %v264_v59 = vld [vmem:[%s1937_s26 + $0x2b0] sm:$0xff]  ;;  %v265_v60 = vld [vmem:[%s1937_s26 + $0x2b8] sm:$0xff] }
  0x70   : > { %1119 = vst [vmem:[%s1977_s20 + $0x1e0] sm:$0xff] %v687_v6  ;;  %1120 = vst [vmem:[%s1977_s20 + $0x1e8] sm:$0xff] %v688_v7  ;;  %v266_v61 = vld [vmem:[%s1937_s26 + $0x2c0] sm:$0xff]  ;;  %v713_v62 = vadd.f32 %v1954_v11, %v264_v59  ;;  %v714_v63 = vadd.f32 %v1949_v8, %v265_v60  ;;  %v267_v1 = vld [vmem:[%s1937_s26 + $0x2c8] sm:$0xff] }
  0x71   : > { %1121 = vst [vmem:[%s1977_s20 + $0x1f0] sm:$0xff] %v689_v14  ;;  %1122 = vst [vmem:[%s1977_s20 + $0x1f8] sm:$0xff] %v690_v15  ;;  %v715_v0 = vadd.f32 %v1951_v9, %v266_v61  ;;  %v268_v2 = vld [vmem:[%s1937_s26 + $0x2d0] sm:$0xff]  ;;  %v269_v3 = vld [vmem:[%s1937_s26 + $0x2d8] sm:$0xff]  ;;  %v716_v4 = vadd.f32 %v1954_v11, %v267_v1 }
  0x72   : > { %1123 = vst [vmem:[%s1977_s20 + $0x200] sm:$0xff] %v691_v16  ;;  %1124 = vst [vmem:[%s1977_s20 + $0x208] sm:$0xff] %v692_v20  ;;  %v717_v5 = vadd.f32 %v1949_v8, %v268_v2  ;;  %v718_v6 = vadd.f32 %v1951_v9, %v269_v3  ;;  %v270_v7 = vld [vmem:[%s1937_s26 + $0x2e0] sm:$0xff]  ;;  %v271_v10 = vld [vmem:[%s1937_s26 + $0x2e8] sm:$0xff] }
  0x73   : > { %1125 = vst [vmem:[%s1977_s20 + $0x210] sm:$0xff] %v693_v21  ;;  %1126 = vst [vmem:[%s1977_s20 + $0x218] sm:$0xff] %v694_v22  ;;  %v272_v12 = vld [vmem:[%s1937_s26 + $0x2f0] sm:$0xff]  ;;  %v719_v13 = vadd.f32 %v1954_v11, %v270_v7  ;;  %v720_v14 = vadd.f32 %v1949_v8, %v271_v10  ;;  %v273_v16 = vld [vmem:[%s1937_s26 + $0x2f8] sm:$0xff] }
  0x74   : > { %1127 = vst [vmem:[%s1977_s20 + $0x220] sm:$0xff] %v695_v26  ;;  %1128 = vst [vmem:[%s1977_s20 + $0x228] sm:$0xff] %v696_v27  ;;  %v721_v15 = vadd.f32 %v1951_v9, %v272_v12  ;;  %v274_v17 = vld [vmem:[%s1937_s26 + $0x300] sm:$0xff]  ;;  %v275_v18 = vld [vmem:[%s1937_s26 + $0x308] sm:$0xff]  ;;  %v722_v19 = vadd.f32 %v1954_v11, %v273_v16 }
  0x75   : > { %1129 = vst [vmem:[%s1977_s20 + $0x230] sm:$0xff] %v697_v28  ;;  %1130 = vst [vmem:[%s1977_s20 + $0x238] sm:$0xff] %v698_v32  ;;  %v723_v20 = vadd.f32 %v1949_v8, %v274_v17  ;;  %v724_v21 = vadd.f32 %v1951_v9, %v275_v18  ;;  %v276_v22 = vld [vmem:[%s1937_s26 + $0x310] sm:$0xff]  ;;  %v277_v23 = vld [vmem:[%s1937_s26 + $0x318] sm:$0xff] }
  0x76   : > { %1131 = vst [vmem:[%s1977_s20 + $0x240] sm:$0xff] %v699_v33  ;;  %1132 = vst [vmem:[%s1977_s20 + $0x248] sm:$0xff] %v700_v34  ;;  %v278_v24 = vld [vmem:[%s1937_s26 + $0x320] sm:$0xff]  ;;  %v725_v25 = vadd.f32 %v1954_v11, %v276_v22  ;;  %v726_v26 = vadd.f32 %v1949_v8, %v277_v23  ;;  %v279_v28 = vld [vmem:[%s1937_s26 + $0x328] sm:$0xff] }
  0x77   : > { %1133 = vst [vmem:[%s1977_s20 + $0x250] sm:$0xff] %v701_v38  ;;  %1134 = vst [vmem:[%s1977_s20 + $0x258] sm:$0xff] %v702_v39  ;;  %v727_v27 = vadd.f32 %v1951_v9, %v278_v24  ;;  %v280_v29 = vld [vmem:[%s1937_s26 + $0x330] sm:$0xff]  ;;  %v281_v30 = vld [vmem:[%s1937_s26 + $0x338] sm:$0xff]  ;;  %v728_v31 = vadd.f32 %v1954_v11, %v279_v28 }
  0x78   : > { %1135 = vst [vmem:[%s1977_s20 + $0x260] sm:$0xff] %v703_v40  ;;  %1136 = vst [vmem:[%s1977_s20 + $0x268] sm:$0xff] %v704_v44  ;;  %v729_v32 = vadd.f32 %v1949_v8, %v280_v29  ;;  %v730_v33 = vadd.f32 %v1951_v9, %v281_v30  ;;  %v282_v34 = vld [vmem:[%s1937_s26 + $0x340] sm:$0xff]  ;;  %v283_v35 = vld [vmem:[%s1937_s26 + $0x348] sm:$0xff] }
  0x79   : > { %1137 = vst [vmem:[%s1977_s20 + $0x270] sm:$0xff] %v705_v45  ;;  %1138 = vst [vmem:[%s1977_s20 + $0x278] sm:$0xff] %v706_v46  ;;  %v284_v36 = vld [vmem:[%s1937_s26 + $0x350] sm:$0xff]  ;;  %v731_v37 = vadd.f32 %v1954_v11, %v282_v34  ;;  %v732_v38 = vadd.f32 %v1949_v8, %v283_v35  ;;  %v285_v40 = vld [vmem:[%s1937_s26 + $0x358] sm:$0xff] }
  0x7a   : > { %1139 = vst [vmem:[%s1977_s20 + $0x280] sm:$0xff] %v707_v50  ;;  %1140 = vst [vmem:[%s1977_s20 + $0x288] sm:$0xff] %v708_v51  ;;  %v733_v39 = vadd.f32 %v1951_v9, %v284_v36  ;;  %v286_v41 = vld [vmem:[%s1937_s26 + $0x360] sm:$0xff]  ;;  %v287_v42 = vld [vmem:[%s1937_s26 + $0x368] sm:$0xff]  ;;  %v734_v43 = vadd.f32 %v1954_v11, %v285_v40 }
  0x7b   : > { %1141 = vst [vmem:[%s1977_s20 + $0x290] sm:$0xff] %v709_v52  ;;  %1142 = vst [vmem:[%s1977_s20 + $0x298] sm:$0xff] %v710_v56  ;;  %v735_v44 = vadd.f32 %v1949_v8, %v286_v41  ;;  %v736_v45 = vadd.f32 %v1951_v9, %v287_v42  ;;  %v288_v46 = vld [vmem:[%s1937_s26 + $0x370] sm:$0xff]  ;;  %v289_v47 = vld [vmem:[%s1937_s26 + $0x378] sm:$0xff] }
  0x7c   : > { %1143 = vst [vmem:[%s1977_s20 + $0x2a0] sm:$0xff] %v711_v57  ;;  %1144 = vst [vmem:[%s1977_s20 + $0x2a8] sm:$0xff] %v712_v58  ;;  %v290_v48 = vld [vmem:[%s1937_s26 + $0x380] sm:$0xff]  ;;  %v737_v49 = vadd.f32 %v1954_v11, %v288_v46  ;;  %v738_v50 = vadd.f32 %v1949_v8, %v289_v47  ;;  %v291_v52 = vld [vmem:[%s1937_s26 + $0x388] sm:$0xff] }
  0x7d   : > { %1145 = vst [vmem:[%s1977_s20 + $0x2b0] sm:$0xff] %v713_v62  ;;  %1146 = vst [vmem:[%s1977_s20 + $0x2b8] sm:$0xff] %v714_v63  ;;  %v739_v51 = vadd.f32 %v1951_v9, %v290_v48  ;;  %v292_v53 = vld [vmem:[%s1937_s26 + $0x390] sm:$0xff]  ;;  %v293_v54 = vld [vmem:[%s1937_s26 + $0x398] sm:$0xff]  ;;  %v740_v55 = vadd.f32 %v1954_v11, %v291_v52 }
  0x7e   : > { %1147 = vst [vmem:[%s1977_s20 + $0x2c0] sm:$0xff] %v715_v0  ;;  %1148 = vst [vmem:[%s1977_s20 + $0x2c8] sm:$0xff] %v716_v4  ;;  %v741_v56 = vadd.f32 %v1949_v8, %v292_v53  ;;  %v742_v57 = vadd.f32 %v1951_v9, %v293_v54  ;;  %v294_v58 = vld [vmem:[%s1937_s26 + $0x3a0] sm:$0xff]  ;;  %v295_v59 = vld [vmem:[%s1937_s26 + $0x3a8] sm:$0xff] }
  0x7f   : > { %1149 = vst [vmem:[%s1977_s20 + $0x2d0] sm:$0xff] %v717_v5  ;;  %1150 = vst [vmem:[%s1977_s20 + $0x2d8] sm:$0xff] %v718_v6  ;;  %v296_v60 = vld [vmem:[%s1937_s26 + $0x3b0] sm:$0xff]  ;;  %v743_v61 = vadd.f32 %v1954_v11, %v294_v58  ;;  %v744_v62 = vadd.f32 %v1949_v8, %v295_v59  ;;  %v297_v0 = vld [vmem:[%s1937_s26 + $0x3b8] sm:$0xff] }
  0x80   : > { %1151 = vst [vmem:[%s1977_s20 + $0x2e0] sm:$0xff] %v719_v13  ;;  %1152 = vst [vmem:[%s1977_s20 + $0x2e8] sm:$0xff] %v720_v14  ;;  %v745_v63 = vadd.f32 %v1951_v9, %v296_v60  ;;  %v298_v1 = vld [vmem:[%s1937_s26 + $0x3c0] sm:$0xff]  ;;  %v299_v2 = vld [vmem:[%s1937_s26 + $0x3c8] sm:$0xff]  ;;  %v746_v3 = vadd.f32 %v1954_v11, %v297_v0 }
  0x81   : > { %1153 = vst [vmem:[%s1977_s20 + $0x2f0] sm:$0xff] %v721_v15  ;;  %1154 = vst [vmem:[%s1977_s20 + $0x2f8] sm:$0xff] %v722_v19  ;;  %v747_v4 = vadd.f32 %v1949_v8, %v298_v1  ;;  %v748_v5 = vadd.f32 %v1951_v9, %v299_v2  ;;  %v300_v6 = vld [vmem:[%s1937_s26 + $0x3d0] sm:$0xff]  ;;  %v301_v7 = vld [vmem:[%s1937_s26 + $0x3d8] sm:$0xff] }
  0x82   : > { %1155 = vst [vmem:[%s1977_s20 + $0x300] sm:$0xff] %v723_v20  ;;  %1156 = vst [vmem:[%s1977_s20 + $0x308] sm:$0xff] %v724_v21  ;;  %v302_v10 = vld [vmem:[%s1937_s26 + $0x3e0] sm:$0xff]  ;;  %v749_v12 = vadd.f32 %v1954_v11, %v300_v6  ;;  %v750_v13 = vadd.f32 %v1949_v8, %v301_v7  ;;  %v303_v15 = vld [vmem:[%s1937_s26 + $0x3e8] sm:$0xff] }
  0x83   : > { %1157 = vst [vmem:[%s1977_s20 + $0x310] sm:$0xff] %v725_v25  ;;  %1158 = vst [vmem:[%s1977_s20 + $0x318] sm:$0xff] %v726_v26  ;;  %v751_v14 = vadd.f32 %v1951_v9, %v302_v10  ;;  %v304_v16 = vld [vmem:[%s1937_s26 + $0x3f0] sm:$0xff]  ;;  %v305_v17 = vld [vmem:[%s1937_s26 + $0x3f8] sm:$0xff]  ;;  %v752_v18 = vadd.f32 %v1954_v11, %v303_v15 }
  0x84   : > { %1159 = vst [vmem:[%s1977_s20 + $0x320] sm:$0xff] %v727_v27  ;;  %1160 = vst [vmem:[%s1977_s20 + $0x328] sm:$0xff] %v728_v31  ;;  %v753_v19 = vadd.f32 %v1949_v8, %v304_v16  ;;  %v754_v20 = vadd.f32 %v1951_v9, %v305_v17  ;;  %v306_v21 = vld [vmem:[%s1937_s26 + $0x400] sm:$0xff]  ;;  %v307_v22 = vld [vmem:[%s1937_s26 + $0x408] sm:$0xff] }
  0x85   : > { %1161 = vst [vmem:[%s1977_s20 + $0x330] sm:$0xff] %v729_v32  ;;  %1162 = vst [vmem:[%s1977_s20 + $0x338] sm:$0xff] %v730_v33  ;;  %v308_v23 = vld [vmem:[%s1937_s26 + $0x410] sm:$0xff]  ;;  %v755_v24 = vadd.f32 %v1954_v11, %v306_v21  ;;  %v756_v25 = vadd.f32 %v1949_v8, %v307_v22  ;;  %v309_v27 = vld [vmem:[%s1937_s26 + $0x418] sm:$0xff] }
  0x86   : > { %1163 = vst [vmem:[%s1977_s20 + $0x340] sm:$0xff] %v731_v37  ;;  %1164 = vst [vmem:[%s1977_s20 + $0x348] sm:$0xff] %v732_v38  ;;  %v757_v26 = vadd.f32 %v1951_v9, %v308_v23  ;;  %v310_v28 = vld [vmem:[%s1937_s26 + $0x420] sm:$0xff]  ;;  %v311_v29 = vld [vmem:[%s1937_s26 + $0x428] sm:$0xff]  ;;  %v758_v30 = vadd.f32 %v1954_v11, %v309_v27 }
  0x87   : > { %1165 = vst [vmem:[%s1977_s20 + $0x350] sm:$0xff] %v733_v39  ;;  %1166 = vst [vmem:[%s1977_s20 + $0x358] sm:$0xff] %v734_v43  ;;  %v759_v31 = vadd.f32 %v1949_v8, %v310_v28  ;;  %v760_v32 = vadd.f32 %v1951_v9, %v311_v29  ;;  %v312_v33 = vld [vmem:[%s1937_s26 + $0x430] sm:$0xff]  ;;  %v313_v34 = vld [vmem:[%s1937_s26 + $0x438] sm:$0xff] }
  0x88   : > { %1167 = vst [vmem:[%s1977_s20 + $0x360] sm:$0xff] %v735_v44  ;;  %1168 = vst [vmem:[%s1977_s20 + $0x368] sm:$0xff] %v736_v45  ;;  %v314_v35 = vld [vmem:[%s1937_s26 + $0x440] sm:$0xff]  ;;  %v761_v36 = vadd.f32 %v1954_v11, %v312_v33  ;;  %v762_v37 = vadd.f32 %v1949_v8, %v313_v34  ;;  %v315_v39 = vld [vmem:[%s1937_s26 + $0x448] sm:$0xff] }
  0x89   : > { %1169 = vst [vmem:[%s1977_s20 + $0x370] sm:$0xff] %v737_v49  ;;  %1170 = vst [vmem:[%s1977_s20 + $0x378] sm:$0xff] %v738_v50  ;;  %v763_v38 = vadd.f32 %v1951_v9, %v314_v35  ;;  %v316_v40 = vld [vmem:[%s1937_s26 + $0x450] sm:$0xff]  ;;  %v317_v41 = vld [vmem:[%s1937_s26 + $0x458] sm:$0xff]  ;;  %v764_v42 = vadd.f32 %v1954_v11, %v315_v39 }
  0x8a   : > { %1171 = vst [vmem:[%s1977_s20 + $0x380] sm:$0xff] %v739_v51  ;;  %1172 = vst [vmem:[%s1977_s20 + $0x388] sm:$0xff] %v740_v55  ;;  %v765_v43 = vadd.f32 %v1949_v8, %v316_v40  ;;  %v766_v44 = vadd.f32 %v1951_v9, %v317_v41  ;;  %v318_v45 = vld [vmem:[%s1937_s26 + $0x460] sm:$0xff]  ;;  %v319_v46 = vld [vmem:[%s1937_s26 + $0x468] sm:$0xff] }
  0x8b   : > { %1173 = vst [vmem:[%s1977_s20 + $0x390] sm:$0xff] %v741_v56  ;;  %1174 = vst [vmem:[%s1977_s20 + $0x398] sm:$0xff] %v742_v57  ;;  %v320_v47 = vld [vmem:[%s1937_s26 + $0x470] sm:$0xff]  ;;  %v767_v48 = vadd.f32 %v1954_v11, %v318_v45  ;;  %v768_v49 = vadd.f32 %v1949_v8, %v319_v46  ;;  %v321_v51 = vld [vmem:[%s1937_s26 + $0x478] sm:$0xff] }
  0x8c   : > { %1175 = vst [vmem:[%s1977_s20 + $0x3a0] sm:$0xff] %v743_v61  ;;  %1176 = vst [vmem:[%s1977_s20 + $0x3a8] sm:$0xff] %v744_v62  ;;  %v769_v50 = vadd.f32 %v1951_v9, %v320_v47  ;;  %v322_v52 = vld [vmem:[%s1937_s26 + $0x480] sm:$0xff]  ;;  %v323_v53 = vld [vmem:[%s1937_s26 + $0x488] sm:$0xff]  ;;  %v770_v54 = vadd.f32 %v1954_v11, %v321_v51 }
  0x8d   : > { %1177 = vst [vmem:[%s1977_s20 + $0x3b0] sm:$0xff] %v745_v63  ;;  %1178 = vst [vmem:[%s1977_s20 + $0x3b8] sm:$0xff] %v746_v3  ;;  %v771_v55 = vadd.f32 %v1949_v8, %v322_v52  ;;  %v772_v56 = vadd.f32 %v1951_v9, %v323_v53  ;;  %v324_v57 = vld [vmem:[%s1937_s26 + $0x490] sm:$0xff]  ;;  %v325_v58 = vld [vmem:[%s1937_s26 + $0x498] sm:$0xff] }
  0x8e   : > { %1179 = vst [vmem:[%s1977_s20 + $0x3c0] sm:$0xff] %v747_v4  ;;  %1180 = vst [vmem:[%s1977_s20 + $0x3c8] sm:$0xff] %v748_v5  ;;  %v326_v59 = vld [vmem:[%s1937_s26 + $0x4a0] sm:$0xff]  ;;  %v773_v60 = vadd.f32 %v1954_v11, %v324_v57  ;;  %v774_v61 = vadd.f32 %v1949_v8, %v325_v58  ;;  %v327_v63 = vld [vmem:[%s1937_s26 + $0x4a8] sm:$0xff] }
  0x8f   : > { %1181 = vst [vmem:[%s1977_s20 + $0x3d0] sm:$0xff] %v749_v12  ;;  %1182 = vst [vmem:[%s1977_s20 + $0x3d8] sm:$0xff] %v750_v13  ;;  %v775_v62 = vadd.f32 %v1951_v9, %v326_v59  ;;  %v328_v0 = vld [vmem:[%s1937_s26 + $0x4b0] sm:$0xff]  ;;  %v329_v1 = vld [vmem:[%s1937_s26 + $0x4b8] sm:$0xff]  ;;  %v776_v2 = vadd.f32 %v1954_v11, %v327_v63 }
  0x90   : > { %1183 = vst [vmem:[%s1977_s20 + $0x3e0] sm:$0xff] %v751_v14  ;;  %1184 = vst [vmem:[%s1977_s20 + $0x3e8] sm:$0xff] %v752_v18  ;;  %v777_v3 = vadd.f32 %v1949_v8, %v328_v0  ;;  %v778_v4 = vadd.f32 %v1951_v9, %v329_v1  ;;  %v330_v5 = vld [vmem:[%s1937_s26 + $0x4c0] sm:$0xff]  ;;  %v331_v6 = vld [vmem:[%s1937_s26 + $0x4c8] sm:$0xff] }
  0x91   : > { %1185 = vst [vmem:[%s1977_s20 + $0x3f0] sm:$0xff] %v753_v19  ;;  %1186 = vst [vmem:[%s1977_s20 + $0x3f8] sm:$0xff] %v754_v20  ;;  %v332_v7 = vld [vmem:[%s1937_s26 + $0x4d0] sm:$0xff]  ;;  %v779_v10 = vadd.f32 %v1954_v11, %v330_v5  ;;  %v780_v12 = vadd.f32 %v1949_v8, %v331_v6  ;;  %v333_v14 = vld [vmem:[%s1937_s26 + $0x4d8] sm:$0xff] }
  0x92   : > { %1187 = vst [vmem:[%s1977_s20 + $0x400] sm:$0xff] %v755_v24  ;;  %1188 = vst [vmem:[%s1977_s20 + $0x408] sm:$0xff] %v756_v25  ;;  %v781_v13 = vadd.f32 %v1951_v9, %v332_v7  ;;  %v334_v15 = vld [vmem:[%s1937_s26 + $0x4e0] sm:$0xff]  ;;  %v335_v16 = vld [vmem:[%s1937_s26 + $0x4e8] sm:$0xff]  ;;  %v782_v17 = vadd.f32 %v1954_v11, %v333_v14 }
  0x93   : > { %1189 = vst [vmem:[%s1977_s20 + $0x410] sm:$0xff] %v757_v26  ;;  %1190 = vst [vmem:[%s1977_s20 + $0x418] sm:$0xff] %v758_v30  ;;  %v783_v18 = vadd.f32 %v1949_v8, %v334_v15  ;;  %v784_v19 = vadd.f32 %v1951_v9, %v335_v16  ;;  %v336_v20 = vld [vmem:[%s1937_s26 + $0x4f0] sm:$0xff]  ;;  %v337_v21 = vld [vmem:[%s1937_s26 + $0x4f8] sm:$0xff] }
  0x94   : > { %1191 = vst [vmem:[%s1977_s20 + $0x420] sm:$0xff] %v759_v31  ;;  %1192 = vst [vmem:[%s1977_s20 + $0x428] sm:$0xff] %v760_v32  ;;  %v338_v22 = vld [vmem:[%s1937_s26 + $0x500] sm:$0xff]  ;;  %v785_v23 = vadd.f32 %v1954_v11, %v336_v20  ;;  %v786_v24 = vadd.f32 %v1949_v8, %v337_v21  ;;  %v339_v26 = vld [vmem:[%s1937_s26 + $0x508] sm:$0xff] }
  0x95   : > { %1193 = vst [vmem:[%s1977_s20 + $0x430] sm:$0xff] %v761_v36  ;;  %1194 = vst [vmem:[%s1977_s20 + $0x438] sm:$0xff] %v762_v37  ;;  %v787_v25 = vadd.f32 %v1951_v9, %v338_v22  ;;  %v340_v27 = vld [vmem:[%s1937_s26 + $0x510] sm:$0xff]  ;;  %v341_v28 = vld [vmem:[%s1937_s26 + $0x518] sm:$0xff]  ;;  %v788_v29 = vadd.f32 %v1954_v11, %v339_v26 }
  0x96   : > { %1195 = vst [vmem:[%s1977_s20 + $0x440] sm:$0xff] %v763_v38  ;;  %1196 = vst [vmem:[%s1977_s20 + $0x448] sm:$0xff] %v764_v42  ;;  %v789_v30 = vadd.f32 %v1949_v8, %v340_v27  ;;  %v790_v31 = vadd.f32 %v1951_v9, %v341_v28  ;;  %v342_v32 = vld [vmem:[%s1937_s26 + $0x520] sm:$0xff]  ;;  %v343_v33 = vld [vmem:[%s1937_s26 + $0x528] sm:$0xff] }
  0x97   : > { %1197 = vst [vmem:[%s1977_s20 + $0x450] sm:$0xff] %v765_v43  ;;  %1198 = vst [vmem:[%s1977_s20 + $0x458] sm:$0xff] %v766_v44  ;;  %v344_v34 = vld [vmem:[%s1937_s26 + $0x530] sm:$0xff]  ;;  %v791_v35 = vadd.f32 %v1954_v11, %v342_v32  ;;  %v792_v36 = vadd.f32 %v1949_v8, %v343_v33  ;;  %v345_v38 = vld [vmem:[%s1937_s26 + $0x538] sm:$0xff] }
  0x98   : > { %1199 = vst [vmem:[%s1977_s20 + $0x460] sm:$0xff] %v767_v48  ;;  %1200 = vst [vmem:[%s1977_s20 + $0x468] sm:$0xff] %v768_v49  ;;  %v793_v37 = vadd.f32 %v1951_v9, %v344_v34  ;;  %v346_v39 = vld [vmem:[%s1937_s26 + $0x540] sm:$0xff]  ;;  %v347_v40 = vld [vmem:[%s1937_s26 + $0x548] sm:$0xff]  ;;  %v794_v41 = vadd.f32 %v1954_v11, %v345_v38 }
  0x99   : > { %1201 = vst [vmem:[%s1977_s20 + $0x470] sm:$0xff] %v769_v50  ;;  %1202 = vst [vmem:[%s1977_s20 + $0x478] sm:$0xff] %v770_v54  ;;  %v795_v42 = vadd.f32 %v1949_v8, %v346_v39  ;;  %v796_v43 = vadd.f32 %v1951_v9, %v347_v40  ;;  %v348_v44 = vld [vmem:[%s1937_s26 + $0x550] sm:$0xff]  ;;  %v349_v45 = vld [vmem:[%s1937_s26 + $0x558] sm:$0xff] }
  0x9a   : > { %1203 = vst [vmem:[%s1977_s20 + $0x480] sm:$0xff] %v771_v55  ;;  %1204 = vst [vmem:[%s1977_s20 + $0x488] sm:$0xff] %v772_v56  ;;  %v350_v46 = vld [vmem:[%s1937_s26 + $0x560] sm:$0xff]  ;;  %v797_v47 = vadd.f32 %v1954_v11, %v348_v44  ;;  %v798_v48 = vadd.f32 %v1949_v8, %v349_v45  ;;  %v351_v50 = vld [vmem:[%s1937_s26 + $0x568] sm:$0xff] }
  0x9b   : > { %1205 = vst [vmem:[%s1977_s20 + $0x490] sm:$0xff] %v773_v60  ;;  %1206 = vst [vmem:[%s1977_s20 + $0x498] sm:$0xff] %v774_v61  ;;  %v799_v49 = vadd.f32 %v1951_v9, %v350_v46  ;;  %v352_v51 = vld [vmem:[%s1937_s26 + $0x570] sm:$0xff]  ;;  %v353_v52 = vld [vmem:[%s1937_s26 + $0x578] sm:$0xff]  ;;  %v800_v53 = vadd.f32 %v1954_v11, %v351_v50 }
  0x9c   : > { %1207 = vst [vmem:[%s1977_s20 + $0x4a0] sm:$0xff] %v775_v62  ;;  %1208 = vst [vmem:[%s1977_s20 + $0x4a8] sm:$0xff] %v776_v2  ;;  %v801_v54 = vadd.f32 %v1949_v8, %v352_v51  ;;  %v802_v55 = vadd.f32 %v1951_v9, %v353_v52  ;;  %v354_v56 = vld [vmem:[%s1937_s26 + $0x580] sm:$0xff]  ;;  %v355_v57 = vld [vmem:[%s1937_s26 + $0x588] sm:$0xff] }
  0x9d   : > { %1209 = vst [vmem:[%s1977_s20 + $0x4b0] sm:$0xff] %v777_v3  ;;  %1210 = vst [vmem:[%s1977_s20 + $0x4b8] sm:$0xff] %v778_v4  ;;  %v356_v58 = vld [vmem:[%s1937_s26 + $0x590] sm:$0xff]  ;;  %v803_v59 = vadd.f32 %v1954_v11, %v354_v56  ;;  %v804_v60 = vadd.f32 %v1949_v8, %v355_v57  ;;  %v357_v62 = vld [vmem:[%s1937_s26 + $0x598] sm:$0xff] }
  0x9e   : > { %1211 = vst [vmem:[%s1977_s20 + $0x4c0] sm:$0xff] %v779_v10  ;;  %1212 = vst [vmem:[%s1977_s20 + $0x4c8] sm:$0xff] %v780_v12  ;;  %v805_v61 = vadd.f32 %v1951_v9, %v356_v58  ;;  %v358_v63 = vld [vmem:[%s1937_s26 + $0x5a0] sm:$0xff]  ;;  %v359_v0 = vld [vmem:[%s1937_s26 + $0x5a8] sm:$0xff]  ;;  %v806_v1 = vadd.f32 %v1954_v11, %v357_v62 }
  0x9f   : > { %1213 = vst [vmem:[%s1977_s20 + $0x4d0] sm:$0xff] %v781_v13  ;;  %1214 = vst [vmem:[%s1977_s20 + $0x4d8] sm:$0xff] %v782_v17  ;;  %v807_v2 = vadd.f32 %v1949_v8, %v358_v63  ;;  %v808_v3 = vadd.f32 %v1951_v9, %v359_v0  ;;  %v360_v4 = vld [vmem:[%s1937_s26 + $0x5b0] sm:$0xff]  ;;  %v361_v5 = vld [vmem:[%s1937_s26 + $0x5b8] sm:$0xff] }
  0xa0   : > { %1215 = vst [vmem:[%s1977_s20 + $0x4e0] sm:$0xff] %v783_v18  ;;  %1216 = vst [vmem:[%s1977_s20 + $0x4e8] sm:$0xff] %v784_v19  ;;  %v362_v6 = vld [vmem:[%s1937_s26 + $0x5c0] sm:$0xff]  ;;  %v809_v7 = vadd.f32 %v1954_v11, %v360_v4  ;;  %v810_v10 = vadd.f32 %v1949_v8, %v361_v5  ;;  %v363_v13 = vld [vmem:[%s1937_s26 + $0x5c8] sm:$0xff] }
  0xa1   : > { %1217 = vst [vmem:[%s1977_s20 + $0x4f0] sm:$0xff] %v785_v23  ;;  %1218 = vst [vmem:[%s1977_s20 + $0x4f8] sm:$0xff] %v786_v24  ;;  %v811_v12 = vadd.f32 %v1951_v9, %v362_v6  ;;  %v364_v14 = vld [vmem:[%s1937_s26 + $0x5d0] sm:$0xff]  ;;  %v365_v15 = vld [vmem:[%s1937_s26 + $0x5d8] sm:$0xff]  ;;  %v812_v16 = vadd.f32 %v1954_v11, %v363_v13 }
  0xa2   : > { %1219 = vst [vmem:[%s1977_s20 + $0x500] sm:$0xff] %v787_v25  ;;  %1220 = vst [vmem:[%s1977_s20 + $0x508] sm:$0xff] %v788_v29  ;;  %v813_v17 = vadd.f32 %v1949_v8, %v364_v14  ;;  %v814_v18 = vadd.f32 %v1951_v9, %v365_v15  ;;  %v366_v19 = vld [vmem:[%s1937_s26 + $0x5e0] sm:$0xff]  ;;  %v367_v20 = vld [vmem:[%s1937_s26 + $0x5e8] sm:$0xff] }
  0xa3   : > { %1221 = vst [vmem:[%s1977_s20 + $0x510] sm:$0xff] %v789_v30  ;;  %1222 = vst [vmem:[%s1977_s20 + $0x518] sm:$0xff] %v790_v31  ;;  %v368_v21 = vld [vmem:[%s1937_s26 + $0x5f0] sm:$0xff]  ;;  %v815_v22 = vadd.f32 %v1954_v11, %v366_v19  ;;  %v816_v23 = vadd.f32 %v1949_v8, %v367_v20  ;;  %v369_v25 = vld [vmem:[%s1937_s26 + $0x5f8] sm:$0xff] }
  0xa4   : > { %1223 = vst [vmem:[%s1977_s20 + $0x520] sm:$0xff] %v791_v35  ;;  %1224 = vst [vmem:[%s1977_s20 + $0x528] sm:$0xff] %v792_v36  ;;  %v817_v24 = vadd.f32 %v1951_v9, %v368_v21  ;;  %v370_v26 = vld [vmem:[%s1937_s26 + $0x600] sm:$0xff]  ;;  %v371_v27 = vld [vmem:[%s1937_s26 + $0x608] sm:$0xff]  ;;  %v818_v28 = vadd.f32 %v1954_v11, %v369_v25 }
  0xa5   : > { %1225 = vst [vmem:[%s1977_s20 + $0x530] sm:$0xff] %v793_v37  ;;  %1226 = vst [vmem:[%s1977_s20 + $0x538] sm:$0xff] %v794_v41  ;;  %v819_v29 = vadd.f32 %v1949_v8, %v370_v26  ;;  %v820_v30 = vadd.f32 %v1951_v9, %v371_v27  ;;  %v372_v31 = vld [vmem:[%s1937_s26 + $0x610] sm:$0xff]  ;;  %v373_v32 = vld [vmem:[%s1937_s26 + $0x618] sm:$0xff] }
  0xa6   : > { %1227 = vst [vmem:[%s1977_s20 + $0x540] sm:$0xff] %v795_v42  ;;  %1228 = vst [vmem:[%s1977_s20 + $0x548] sm:$0xff] %v796_v43  ;;  %v374_v33 = vld [vmem:[%s1937_s26 + $0x620] sm:$0xff]  ;;  %v821_v34 = vadd.f32 %v1954_v11, %v372_v31  ;;  %v822_v35 = vadd.f32 %v1949_v8, %v373_v32  ;;  %v375_v37 = vld [vmem:[%s1937_s26 + $0x628] sm:$0xff] }
  0xa7   : > { %1229 = vst [vmem:[%s1977_s20 + $0x550] sm:$0xff] %v797_v47  ;;  %1230 = vst [vmem:[%s1977_s20 + $0x558] sm:$0xff] %v798_v48  ;;  %v823_v36 = vadd.f32 %v1951_v9, %v374_v33  ;;  %v376_v38 = vld [vmem:[%s1937_s26 + $0x630] sm:$0xff]  ;;  %v377_v39 = vld [vmem:[%s1937_s26 + $0x638] sm:$0xff]  ;;  %v824_v40 = vadd.f32 %v1954_v11, %v375_v37 }
  0xa8   : > { %1231 = vst [vmem:[%s1977_s20 + $0x560] sm:$0xff] %v799_v49  ;;  %1232 = vst [vmem:[%s1977_s20 + $0x568] sm:$0xff] %v800_v53  ;;  %v825_v41 = vadd.f32 %v1949_v8, %v376_v38  ;;  %v826_v42 = vadd.f32 %v1951_v9, %v377_v39  ;;  %v378_v43 = vld [vmem:[%s1937_s26 + $0x640] sm:$0xff]  ;;  %v379_v44 = vld [vmem:[%s1937_s26 + $0x648] sm:$0xff] }
  0xa9   : > { %1233 = vst [vmem:[%s1977_s20 + $0x570] sm:$0xff] %v801_v54  ;;  %1234 = vst [vmem:[%s1977_s20 + $0x578] sm:$0xff] %v802_v55  ;;  %v380_v45 = vld [vmem:[%s1937_s26 + $0x650] sm:$0xff]  ;;  %v827_v46 = vadd.f32 %v1954_v11, %v378_v43  ;;  %v828_v47 = vadd.f32 %v1949_v8, %v379_v44  ;;  %v381_v49 = vld [vmem:[%s1937_s26 + $0x658] sm:$0xff] }
  0xaa   : > { %1235 = vst [vmem:[%s1977_s20 + $0x580] sm:$0xff] %v803_v59  ;;  %1236 = vst [vmem:[%s1977_s20 + $0x588] sm:$0xff] %v804_v60  ;;  %v829_v48 = vadd.f32 %v1951_v9, %v380_v45  ;;  %v382_v50 = vld [vmem:[%s1937_s26 + $0x660] sm:$0xff]  ;;  %v383_v51 = vld [vmem:[%s1937_s26 + $0x668] sm:$0xff]  ;;  %v830_v52 = vadd.f32 %v1954_v11, %v381_v49 }
  0xab   : > { %1237 = vst [vmem:[%s1977_s20 + $0x590] sm:$0xff] %v805_v61  ;;  %1238 = vst [vmem:[%s1977_s20 + $0x598] sm:$0xff] %v806_v1  ;;  %v831_v53 = vadd.f32 %v1949_v8, %v382_v50  ;;  %v832_v54 = vadd.f32 %v1951_v9, %v383_v51  ;;  %v384_v55 = vld [vmem:[%s1937_s26 + $0x670] sm:$0xff]  ;;  %v385_v56 = vld [vmem:[%s1937_s26 + $0x678] sm:$0xff] }
  0xac   : > { %1239 = vst [vmem:[%s1977_s20 + $0x5a0] sm:$0xff] %v807_v2  ;;  %1240 = vst [vmem:[%s1977_s20 + $0x5a8] sm:$0xff] %v808_v3  ;;  %v386_v57 = vld [vmem:[%s1937_s26 + $0x680] sm:$0xff]  ;;  %v833_v58 = vadd.f32 %v1954_v11, %v384_v55  ;;  %v834_v59 = vadd.f32 %v1949_v8, %v385_v56  ;;  %v387_v61 = vld [vmem:[%s1937_s26 + $0x688] sm:$0xff] }
  0xad   : > { %1241 = vst [vmem:[%s1977_s20 + $0x5b0] sm:$0xff] %v809_v7  ;;  %1242 = vst [vmem:[%s1977_s20 + $0x5b8] sm:$0xff] %v810_v10  ;;  %v835_v60 = vadd.f32 %v1951_v9, %v386_v57  ;;  %v388_v62 = vld [vmem:[%s1937_s26 + $0x690] sm:$0xff]  ;;  %v389_v63 = vld [vmem:[%s1937_s26 + $0x698] sm:$0xff]  ;;  %v836_v0 = vadd.f32 %v1954_v11, %v387_v61 }
  0xae   : > { %1243 = vst [vmem:[%s1977_s20 + $0x5c0] sm:$0xff] %v811_v12  ;;  %1244 = vst [vmem:[%s1977_s20 + $0x5c8] sm:$0xff] %v812_v16  ;;  %v837_v1 = vadd.f32 %v1949_v8, %v388_v62  ;;  %v838_v2 = vadd.f32 %v1951_v9, %v389_v63  ;;  %v390_v3 = vld [vmem:[%s1937_s26 + $0x6a0] sm:$0xff]  ;;  %v391_v4 = vld [vmem:[%s1937_s26 + $0x6a8] sm:$0xff] }
  0xaf   : > { %1245 = vst [vmem:[%s1977_s20 + $0x5d0] sm:$0xff] %v813_v17  ;;  %1246 = vst [vmem:[%s1977_s20 + $0x5d8] sm:$0xff] %v814_v18  ;;  %v392_v5 = vld [vmem:[%s1937_s26 + $0x6b0] sm:$0xff]  ;;  %v839_v6 = vadd.f32 %v1954_v11, %v390_v3  ;;  %v840_v7 = vadd.f32 %v1949_v8, %v391_v4  ;;  %v393_v12 = vld [vmem:[%s1937_s26 + $0x6b8] sm:$0xff] }
  0xb0   : > { %1247 = vst [vmem:[%s1977_s20 + $0x5e0] sm:$0xff] %v815_v22  ;;  %1248 = vst [vmem:[%s1977_s20 + $0x5e8] sm:$0xff] %v816_v23  ;;  %v841_v10 = vadd.f32 %v1951_v9, %v392_v5  ;;  %v394_v13 = vld [vmem:[%s1937_s26 + $0x6c0] sm:$0xff]  ;;  %v395_v14 = vld [vmem:[%s1937_s26 + $0x6c8] sm:$0xff]  ;;  %v842_v15 = vadd.f32 %v1954_v11, %v393_v12 }
  0xb1   : > { %1249 = vst [vmem:[%s1977_s20 + $0x5f0] sm:$0xff] %v817_v24  ;;  %1250 = vst [vmem:[%s1977_s20 + $0x5f8] sm:$0xff] %v818_v28  ;;  %v843_v16 = vadd.f32 %v1949_v8, %v394_v13  ;;  %v844_v17 = vadd.f32 %v1951_v9, %v395_v14  ;;  %v396_v18 = vld [vmem:[%s1937_s26 + $0x6d0] sm:$0xff]  ;;  %v397_v19 = vld [vmem:[%s1937_s26 + $0x6d8] sm:$0xff] }
  0xb2   : > { %1251 = vst [vmem:[%s1977_s20 + $0x600] sm:$0xff] %v819_v29  ;;  %1252 = vst [vmem:[%s1977_s20 + $0x608] sm:$0xff] %v820_v30  ;;  %v398_v20 = vld [vmem:[%s1937_s26 + $0x6e0] sm:$0xff]  ;;  %v845_v21 = vadd.f32 %v1954_v11, %v396_v18  ;;  %v846_v22 = vadd.f32 %v1949_v8, %v397_v19  ;;  %v399_v24 = vld [vmem:[%s1937_s26 + $0x6e8] sm:$0xff] }
  0xb3   : > { %1253 = vst [vmem:[%s1977_s20 + $0x610] sm:$0xff] %v821_v34  ;;  %1254 = vst [vmem:[%s1977_s20 + $0x618] sm:$0xff] %v822_v35  ;;  %v847_v23 = vadd.f32 %v1951_v9, %v398_v20  ;;  %v400_v25 = vld [vmem:[%s1937_s26 + $0x6f0] sm:$0xff]  ;;  %v401_v26 = vld [vmem:[%s1937_s26 + $0x6f8] sm:$0xff]  ;;  %v848_v27 = vadd.f32 %v1954_v11, %v399_v24 }
  0xb4   : > { %1255 = vst [vmem:[%s1977_s20 + $0x620] sm:$0xff] %v823_v36  ;;  %1256 = vst [vmem:[%s1977_s20 + $0x628] sm:$0xff] %v824_v40  ;;  %v849_v28 = vadd.f32 %v1949_v8, %v400_v25  ;;  %v850_v29 = vadd.f32 %v1951_v9, %v401_v26  ;;  %v402_v30 = vld [vmem:[%s1937_s26 + $0x700] sm:$0xff]  ;;  %v403_v31 = vld [vmem:[%s1937_s26 + $0x708] sm:$0xff] }
  0xb5   : > { %1257 = vst [vmem:[%s1977_s20 + $0x630] sm:$0xff] %v825_v41  ;;  %1258 = vst [vmem:[%s1977_s20 + $0x638] sm:$0xff] %v826_v42  ;;  %v404_v32 = vld [vmem:[%s1937_s26 + $0x710] sm:$0xff]  ;;  %v851_v33 = vadd.f32 %v1954_v11, %v402_v30  ;;  %v852_v34 = vadd.f32 %v1949_v8, %v403_v31  ;;  %v405_v36 = vld [vmem:[%s1937_s26 + $0x718] sm:$0xff] }
  0xb6   : > { %1259 = vst [vmem:[%s1977_s20 + $0x640] sm:$0xff] %v827_v46  ;;  %1260 = vst [vmem:[%s1977_s20 + $0x648] sm:$0xff] %v828_v47  ;;  %v853_v35 = vadd.f32 %v1951_v9, %v404_v32  ;;  %v406_v37 = vld [vmem:[%s1937_s26 + $0x720] sm:$0xff]  ;;  %v407_v38 = vld [vmem:[%s1937_s26 + $0x728] sm:$0xff]  ;;  %v854_v39 = vadd.f32 %v1954_v11, %v405_v36 }
  0xb7   : > { %1261 = vst [vmem:[%s1977_s20 + $0x650] sm:$0xff] %v829_v48  ;;  %1262 = vst [vmem:[%s1977_s20 + $0x658] sm:$0xff] %v830_v52  ;;  %v855_v40 = vadd.f32 %v1949_v8, %v406_v37  ;;  %v856_v41 = vadd.f32 %v1951_v9, %v407_v38  ;;  %v408_v42 = vld [vmem:[%s1937_s26 + $0x730] sm:$0xff]  ;;  %v409_v43 = vld [vmem:[%s1937_s26 + $0x738] sm:$0xff] }
  0xb8   : > { %1263 = vst [vmem:[%s1977_s20 + $0x660] sm:$0xff] %v831_v53  ;;  %1264 = vst [vmem:[%s1977_s20 + $0x668] sm:$0xff] %v832_v54  ;;  %v410_v44 = vld [vmem:[%s1937_s26 + $0x740] sm:$0xff]  ;;  %v857_v45 = vadd.f32 %v1954_v11, %v408_v42  ;;  %v858_v46 = vadd.f32 %v1949_v8, %v409_v43  ;;  %v411_v48 = vld [vmem:[%s1937_s26 + $0x748] sm:$0xff] }
  0xb9   : > { %1265 = vst [vmem:[%s1977_s20 + $0x670] sm:$0xff] %v833_v58  ;;  %1266 = vst [vmem:[%s1977_s20 + $0x678] sm:$0xff] %v834_v59  ;;  %v859_v47 = vadd.f32 %v1951_v9, %v410_v44  ;;  %v412_v49 = vld [vmem:[%s1937_s26 + $0x750] sm:$0xff]  ;;  %v413_v50 = vld [vmem:[%s1937_s26 + $0x758] sm:$0xff]  ;;  %v860_v51 = vadd.f32 %v1954_v11, %v411_v48 }
  0xba   : > { %1267 = vst [vmem:[%s1977_s20 + $0x680] sm:$0xff] %v835_v60  ;;  %1268 = vst [vmem:[%s1977_s20 + $0x688] sm:$0xff] %v836_v0  ;;  %v861_v52 = vadd.f32 %v1949_v8, %v412_v49  ;;  %v862_v53 = vadd.f32 %v1951_v9, %v413_v50  ;;  %v414_v54 = vld [vmem:[%s1937_s26 + $0x760] sm:$0xff]  ;;  %v415_v55 = vld [vmem:[%s1937_s26 + $0x768] sm:$0xff] }
  0xbb   : > { %1269 = vst [vmem:[%s1977_s20 + $0x690] sm:$0xff] %v837_v1  ;;  %1270 = vst [vmem:[%s1977_s20 + $0x698] sm:$0xff] %v838_v2  ;;  %v416_v56 = vld [vmem:[%s1937_s26 + $0x770] sm:$0xff]  ;;  %v863_v57 = vadd.f32 %v1954_v11, %v414_v54  ;;  %v864_v58 = vadd.f32 %v1949_v8, %v415_v55  ;;  %v417_v60 = vld [vmem:[%s1937_s26 + $0x778] sm:$0xff] }
  0xbc   : > { %1271 = vst [vmem:[%s1977_s20 + $0x6a0] sm:$0xff] %v839_v6  ;;  %1272 = vst [vmem:[%s1977_s20 + $0x6a8] sm:$0xff] %v840_v7  ;;  %v865_v59 = vadd.f32 %v1951_v9, %v416_v56  ;;  %v418_v61 = vld [vmem:[%s1937_s26 + $0x780] sm:$0xff]  ;;  %v419_v62 = vld [vmem:[%s1937_s26 + $0x788] sm:$0xff]  ;;  %v866_v63 = vadd.f32 %v1954_v11, %v417_v60 }
  0xbd   : > { %1273 = vst [vmem:[%s1977_s20 + $0x6b0] sm:$0xff] %v841_v10  ;;  %1274 = vst [vmem:[%s1977_s20 + $0x6b8] sm:$0xff] %v842_v15  ;;  %v867_v0 = vadd.f32 %v1949_v8, %v418_v61  ;;  %v868_v1 = vadd.f32 %v1951_v9, %v419_v62  ;;  %v420_v2 = vld [vmem:[%s1937_s26 + $0x790] sm:$0xff]  ;;  %v421_v3 = vld [vmem:[%s1937_s26 + $0x798] sm:$0xff] }
  0xbe   : > { %1275 = vst [vmem:[%s1977_s20 + $0x6c0] sm:$0xff] %v843_v16  ;;  %1276 = vst [vmem:[%s1977_s20 + $0x6c8] sm:$0xff] %v844_v17  ;;  %v422_v4 = vld [vmem:[%s1937_s26 + $0x7a0] sm:$0xff]  ;;  %v869_v5 = vadd.f32 %v1954_v11, %v420_v2  ;;  %v870_v6 = vadd.f32 %v1949_v8, %v421_v3  ;;  %v423_v10 = vld [vmem:[%s1937_s26 + $0x7a8] sm:$0xff] }
  0xbf   : > { %1277 = vst [vmem:[%s1977_s20 + $0x6d0] sm:$0xff] %v845_v21  ;;  %1278 = vst [vmem:[%s1977_s20 + $0x6d8] sm:$0xff] %v846_v22  ;;  %v871_v7 = vadd.f32 %v1951_v9, %v422_v4  ;;  %v424_v12 = vld [vmem:[%s1937_s26 + $0x7b0] sm:$0xff]  ;;  %v425_v13 = vld [vmem:[%s1937_s26 + $0x7b8] sm:$0xff]  ;;  %v872_v14 = vadd.f32 %v1954_v11, %v423_v10 }
  0xc0   : > { %1279 = vst [vmem:[%s1977_s20 + $0x6e0] sm:$0xff] %v847_v23  ;;  %1280 = vst [vmem:[%s1977_s20 + $0x6e8] sm:$0xff] %v848_v27  ;;  %v873_v15 = vadd.f32 %v1949_v8, %v424_v12  ;;  %v874_v16 = vadd.f32 %v1951_v9, %v425_v13  ;;  %v426_v17 = vld [vmem:[%s1937_s26 + $0x7c0] sm:$0xff]  ;;  %v427_v18 = vld [vmem:[%s1937_s26 + $0x7c8] sm:$0xff] }
  0xc1   : > { %1281 = vst [vmem:[%s1977_s20 + $0x6f0] sm:$0xff] %v849_v28  ;;  %1282 = vst [vmem:[%s1977_s20 + $0x6f8] sm:$0xff] %v850_v29  ;;  %v428_v19 = vld [vmem:[%s1937_s26 + $0x7d0] sm:$0xff]  ;;  %v875_v20 = vadd.f32 %v1954_v11, %v426_v17  ;;  %v876_v21 = vadd.f32 %v1949_v8, %v427_v18  ;;  %v429_v23 = vld [vmem:[%s1937_s26 + $0x7d8] sm:$0xff] }
  0xc2   : > { %1283 = vst [vmem:[%s1977_s20 + $0x700] sm:$0xff] %v851_v33  ;;  %1284 = vst [vmem:[%s1977_s20 + $0x708] sm:$0xff] %v852_v34  ;;  %v877_v22 = vadd.f32 %v1951_v9, %v428_v19  ;;  %v430_v24 = vld [vmem:[%s1937_s26 + $0x7e0] sm:$0xff]  ;;  %v431_v25 = vld [vmem:[%s1937_s26 + $0x7e8] sm:$0xff]  ;;  %v878_v26 = vadd.f32 %v1954_v11, %v429_v23 }
  0xc3   : > { %1285 = vst [vmem:[%s1977_s20 + $0x710] sm:$0xff] %v853_v35  ;;  %1286 = vst [vmem:[%s1977_s20 + $0x718] sm:$0xff] %v854_v39  ;;  %v879_v27 = vadd.f32 %v1949_v8, %v430_v24  ;;  %v880_v28 = vadd.f32 %v1951_v9, %v431_v25  ;;  %v432_v29 = vld [vmem:[%s1937_s26 + $0x7f0] sm:$0xff]  ;;  %v433_v30 = vld [vmem:[%s1937_s26 + $0x7f8] sm:$0xff] }
  0xc4   : > { %1287 = vst [vmem:[%s1977_s20 + $0x720] sm:$0xff] %v855_v40  ;;  %1288 = vst [vmem:[%s1977_s20 + $0x728] sm:$0xff] %v856_v41  ;;  %v434_v31 = vld [vmem:[%s1937_s26 + $0x800] sm:$0xff]  ;;  %v881_v32 = vadd.f32 %v1954_v11, %v432_v29  ;;  %v882_v33 = vadd.f32 %v1949_v8, %v433_v30  ;;  %v435_v35 = vld [vmem:[%s1937_s26 + $0x808] sm:$0xff] }
  0xc5   : > { %1289 = vst [vmem:[%s1977_s20 + $0x730] sm:$0xff] %v857_v45  ;;  %1290 = vst [vmem:[%s1977_s20 + $0x738] sm:$0xff] %v858_v46  ;;  %v883_v34 = vadd.f32 %v1951_v9, %v434_v31  ;;  %v436_v36 = vld [vmem:[%s1937_s26 + $0x810] sm:$0xff]  ;;  %v437_v37 = vld [vmem:[%s1937_s26 + $0x818] sm:$0xff]  ;;  %v884_v38 = vadd.f32 %v1954_v11, %v435_v35 }
  0xc6   : > { %1291 = vst [vmem:[%s1977_s20 + $0x740] sm:$0xff] %v859_v47  ;;  %1292 = vst [vmem:[%s1977_s20 + $0x748] sm:$0xff] %v860_v51  ;;  %v885_v39 = vadd.f32 %v1949_v8, %v436_v36  ;;  %v886_v40 = vadd.f32 %v1951_v9, %v437_v37  ;;  %v438_v41 = vld [vmem:[%s1937_s26 + $0x820] sm:$0xff]  ;;  %v439_v42 = vld [vmem:[%s1937_s26 + $0x828] sm:$0xff] }
  0xc7   : > { %1293 = vst [vmem:[%s1977_s20 + $0x750] sm:$0xff] %v861_v52  ;;  %1294 = vst [vmem:[%s1977_s20 + $0x758] sm:$0xff] %v862_v53  ;;  %v440_v43 = vld [vmem:[%s1937_s26 + $0x830] sm:$0xff]  ;;  %v887_v44 = vadd.f32 %v1954_v11, %v438_v41  ;;  %v888_v45 = vadd.f32 %v1949_v8, %v439_v42  ;;  %v441_v47 = vld [vmem:[%s1937_s26 + $0x838] sm:$0xff] }
  0xc8   : > { %1295 = vst [vmem:[%s1977_s20 + $0x760] sm:$0xff] %v863_v57  ;;  %1296 = vst [vmem:[%s1977_s20 + $0x768] sm:$0xff] %v864_v58  ;;  %v889_v46 = vadd.f32 %v1951_v9, %v440_v43  ;;  %v442_v48 = vld [vmem:[%s1937_s26 + $0x840] sm:$0xff]  ;;  %v443_v49 = vld [vmem:[%s1937_s26 + $0x848] sm:$0xff]  ;;  %v890_v50 = vadd.f32 %v1954_v11, %v441_v47 }
  0xc9   : > { %1297 = vst [vmem:[%s1977_s20 + $0x770] sm:$0xff] %v865_v59  ;;  %1298 = vst [vmem:[%s1977_s20 + $0x778] sm:$0xff] %v866_v63  ;;  %v891_v51 = vadd.f32 %v1949_v8, %v442_v48  ;;  %v892_v52 = vadd.f32 %v1951_v9, %v443_v49  ;;  %v444_v53 = vld [vmem:[%s1937_s26 + $0x850] sm:$0xff]  ;;  %v445_v54 = vld [vmem:[%s1937_s26 + $0x858] sm:$0xff] }
  0xca   : > { %1299 = vst [vmem:[%s1977_s20 + $0x780] sm:$0xff] %v867_v0  ;;  %1300 = vst [vmem:[%s1977_s20 + $0x788] sm:$0xff] %v868_v1  ;;  %v446_v55 = vld [vmem:[%s1937_s26 + $0x860] sm:$0xff]  ;;  %v893_v56 = vadd.f32 %v1954_v11, %v444_v53  ;;  %v894_v57 = vadd.f32 %v1949_v8, %v445_v54  ;;  %v447_v59 = vld [vmem:[%s1937_s26 + $0x868] sm:$0xff] }
  0xcb   : > { %1301 = vst [vmem:[%s1977_s20 + $0x790] sm:$0xff] %v869_v5  ;;  %1302 = vst [vmem:[%s1977_s20 + $0x798] sm:$0xff] %v870_v6  ;;  %v895_v58 = vadd.f32 %v1951_v9, %v446_v55  ;;  %v448_v60 = vld [vmem:[%s1937_s26 + $0x870] sm:$0xff]  ;;  %v449_v61 = vld [vmem:[%s1937_s26 + $0x878] sm:$0xff]  ;;  %v896_v62 = vadd.f32 %v1954_v11, %v447_v59 }
  0xcc   : > { %1303 = vst [vmem:[%s1977_s20 + $0x7a0] sm:$0xff] %v871_v7  ;;  %1304 = vst [vmem:[%s1977_s20 + $0x7a8] sm:$0xff] %v872_v14  ;;  %v897_v63 = vadd.f32 %v1949_v8, %v448_v60  ;;  %v898_v0 = vadd.f32 %v1951_v9, %v449_v61  ;;  %v450_v1 = vld [vmem:[%s1937_s26 + $0x880] sm:$0xff]  ;;  %v451_v2 = vld [vmem:[%s1937_s26 + $0x888] sm:$0xff] }
  0xcd   : > { %1305 = vst [vmem:[%s1977_s20 + $0x7b0] sm:$0xff] %v873_v15  ;;  %1306 = vst [vmem:[%s1977_s20 + $0x7b8] sm:$0xff] %v874_v16  ;;  %v452_v3 = vld [vmem:[%s1937_s26 + $0x890] sm:$0xff]  ;;  %v899_v4 = vadd.f32 %v1954_v11, %v450_v1  ;;  %v900_v5 = vadd.f32 %v1949_v8, %v451_v2  ;;  %v453_v7 = vld [vmem:[%s1937_s26 + $0x898] sm:$0xff] }
  0xce   : > { %1307 = vst [vmem:[%s1977_s20 + $0x7c0] sm:$0xff] %v875_v20  ;;  %1308 = vst [vmem:[%s1977_s20 + $0x7c8] sm:$0xff] %v876_v21  ;;  %v901_v6 = vadd.f32 %v1951_v9, %v452_v3  ;;  %v454_v10 = vld [vmem:[%s1937_s26 + $0x8a0] sm:$0xff]  ;;  %v455_v12 = vld [vmem:[%s1937_s26 + $0x8a8] sm:$0xff]  ;;  %v902_v13 = vadd.f32 %v1954_v11, %v453_v7 }
  0xcf   : > { %1309 = vst [vmem:[%s1977_s20 + $0x7d0] sm:$0xff] %v877_v22  ;;  %1310 = vst [vmem:[%s1977_s20 + $0x7d8] sm:$0xff] %v878_v26  ;;  %v903_v14 = vadd.f32 %v1949_v8, %v454_v10  ;;  %v904_v15 = vadd.f32 %v1951_v9, %v455_v12  ;;  %v456_v16 = vld [vmem:[%s1937_s26 + $0x8b0] sm:$0xff]  ;;  %v457_v17 = vld [vmem:[%s1937_s26 + $0x8b8] sm:$0xff] }
  0xd0   : > { %1311 = vst [vmem:[%s1977_s20 + $0x7e0] sm:$0xff] %v879_v27  ;;  %1312 = vst [vmem:[%s1977_s20 + $0x7e8] sm:$0xff] %v880_v28  ;;  %v458_v18 = vld [vmem:[%s1937_s26 + $0x8c0] sm:$0xff]  ;;  %v905_v19 = vadd.f32 %v1954_v11, %v456_v16  ;;  %v906_v20 = vadd.f32 %v1949_v8, %v457_v17  ;;  %v459_v22 = vld [vmem:[%s1937_s26 + $0x8c8] sm:$0xff] }
  0xd1   : > { %1313 = vst [vmem:[%s1977_s20 + $0x7f0] sm:$0xff] %v881_v32  ;;  %1314 = vst [vmem:[%s1977_s20 + $0x7f8] sm:$0xff] %v882_v33  ;;  %v907_v21 = vadd.f32 %v1951_v9, %v458_v18  ;;  %v460_v23 = vld [vmem:[%s1937_s26 + $0x8d0] sm:$0xff]  ;;  %v461_v24 = vld [vmem:[%s1937_s26 + $0x8d8] sm:$0xff]  ;;  %v908_v25 = vadd.f32 %v1954_v11, %v459_v22 }
  0xd2   : > { %1315 = vst [vmem:[%s1977_s20 + $0x800] sm:$0xff] %v883_v34  ;;  %1316 = vst [vmem:[%s1977_s20 + $0x808] sm:$0xff] %v884_v38  ;;  %v909_v26 = vadd.f32 %v1949_v8, %v460_v23  ;;  %v910_v27 = vadd.f32 %v1951_v9, %v461_v24  ;;  %v462_v28 = vld [vmem:[%s1937_s26 + $0x8e0] sm:$0xff]  ;;  %v463_v29 = vld [vmem:[%s1937_s26 + $0x8e8] sm:$0xff] }
  0xd3   : > { %1317 = vst [vmem:[%s1977_s20 + $0x810] sm:$0xff] %v885_v39  ;;  %1318 = vst [vmem:[%s1977_s20 + $0x818] sm:$0xff] %v886_v40  ;;  %v464_v30 = vld [vmem:[%s1937_s26 + $0x8f0] sm:$0xff]  ;;  %v911_v31 = vadd.f32 %v1954_v11, %v462_v28  ;;  %v912_v32 = vadd.f32 %v1949_v8, %v463_v29  ;;  %v465_v34 = vld [vmem:[%s1937_s26 + $0x8f8] sm:$0xff] }
  0xd4   : > { %1319 = vst [vmem:[%s1977_s20 + $0x820] sm:$0xff] %v887_v44  ;;  %1320 = vst [vmem:[%s1977_s20 + $0x828] sm:$0xff] %v888_v45  ;;  %v913_v33 = vadd.f32 %v1951_v9, %v464_v30  ;;  %v466_v35 = vld [vmem:[%s1937_s26 + $0x900] sm:$0xff]  ;;  %v467_v36 = vld [vmem:[%s1937_s26 + $0x908] sm:$0xff]  ;;  %v914_v37 = vadd.f32 %v1954_v11, %v465_v34 }
  0xd5   : > { %1321 = vst [vmem:[%s1977_s20 + $0x830] sm:$0xff] %v889_v46  ;;  %1322 = vst [vmem:[%s1977_s20 + $0x838] sm:$0xff] %v890_v50  ;;  %v915_v38 = vadd.f32 %v1949_v8, %v466_v35  ;;  %v916_v39 = vadd.f32 %v1951_v9, %v467_v36  ;;  %v468_v40 = vld [vmem:[%s1937_s26 + $0x910] sm:$0xff]  ;;  %v469_v41 = vld [vmem:[%s1937_s26 + $0x918] sm:$0xff] }
  0xd6   : > { %1323 = vst [vmem:[%s1977_s20 + $0x840] sm:$0xff] %v891_v51  ;;  %1324 = vst [vmem:[%s1977_s20 + $0x848] sm:$0xff] %v892_v52  ;;  %v470_v42 = vld [vmem:[%s1937_s26 + $0x920] sm:$0xff]  ;;  %v917_v43 = vadd.f32 %v1954_v11, %v468_v40  ;;  %v918_v44 = vadd.f32 %v1949_v8, %v469_v41  ;;  %v471_v46 = vld [vmem:[%s1937_s26 + $0x928] sm:$0xff] }
  0xd7   : > { %1325 = vst [vmem:[%s1977_s20 + $0x850] sm:$0xff] %v893_v56  ;;  %1326 = vst [vmem:[%s1977_s20 + $0x858] sm:$0xff] %v894_v57  ;;  %v919_v45 = vadd.f32 %v1951_v9, %v470_v42  ;;  %v472_v47 = vld [vmem:[%s1937_s26 + $0x930] sm:$0xff]  ;;  %v473_v48 = vld [vmem:[%s1937_s26 + $0x938] sm:$0xff]  ;;  %v920_v49 = vadd.f32 %v1954_v11, %v471_v46 }
  0xd8   : > { %1327 = vst [vmem:[%s1977_s20 + $0x860] sm:$0xff] %v895_v58  ;;  %1328 = vst [vmem:[%s1977_s20 + $0x868] sm:$0xff] %v896_v62  ;;  %v921_v50 = vadd.f32 %v1949_v8, %v472_v47  ;;  %v922_v51 = vadd.f32 %v1951_v9, %v473_v48  ;;  %v474_v52 = vld [vmem:[%s1937_s26 + $0x940] sm:$0xff]  ;;  %v475_v53 = vld [vmem:[%s1937_s26 + $0x948] sm:$0xff] }
  0xd9   : > { %1329 = vst [vmem:[%s1977_s20 + $0x870] sm:$0xff] %v897_v63  ;;  %1330 = vst [vmem:[%s1977_s20 + $0x878] sm:$0xff] %v898_v0  ;;  %v476_v54 = vld [vmem:[%s1937_s26 + $0x950] sm:$0xff]  ;;  %v923_v55 = vadd.f32 %v1954_v11, %v474_v52  ;;  %v924_v56 = vadd.f32 %v1949_v8, %v475_v53  ;;  %v477_v58 = vld [vmem:[%s1937_s26 + $0x958] sm:$0xff] }
  0xda   : > { %1331 = vst [vmem:[%s1977_s20 + $0x880] sm:$0xff] %v899_v4  ;;  %1332 = vst [vmem:[%s1977_s20 + $0x888] sm:$0xff] %v900_v5  ;;  %v925_v57 = vadd.f32 %v1951_v9, %v476_v54  ;;  %v478_v59 = vld [vmem:[%s1937_s26 + $0x960] sm:$0xff]  ;;  %v479_v60 = vld [vmem:[%s1937_s26 + $0x968] sm:$0xff]  ;;  %v926_v61 = vadd.f32 %v1954_v11, %v477_v58 }
  0xdb   : > { %1333 = vst [vmem:[%s1977_s20 + $0x890] sm:$0xff] %v901_v6  ;;  %1334 = vst [vmem:[%s1977_s20 + $0x898] sm:$0xff] %v902_v13  ;;  %v927_v62 = vadd.f32 %v1949_v8, %v478_v59  ;;  %v928_v63 = vadd.f32 %v1951_v9, %v479_v60  ;;  %v480_v0 = vld [vmem:[%s1937_s26 + $0x970] sm:$0xff]  ;;  %v481_v1 = vld [vmem:[%s1937_s26 + $0x978] sm:$0xff] }
  0xdc   : > { %1335 = vst [vmem:[%s1977_s20 + $0x8a0] sm:$0xff] %v903_v14  ;;  %1336 = vst [vmem:[%s1977_s20 + $0x8a8] sm:$0xff] %v904_v15  ;;  %v482_v2 = vld [vmem:[%s1937_s26 + $0x980] sm:$0xff]  ;;  %v929_v3 = vadd.f32 %v1954_v11, %v480_v0  ;;  %v930_v4 = vadd.f32 %v1949_v8, %v481_v1  ;;  %v483_v6 = vld [vmem:[%s1937_s26 + $0x988] sm:$0xff] }
  0xdd   : > { %1337 = vst [vmem:[%s1977_s20 + $0x8b0] sm:$0xff] %v905_v19  ;;  %1338 = vst [vmem:[%s1977_s20 + $0x8b8] sm:$0xff] %v906_v20  ;;  %v931_v5 = vadd.f32 %v1951_v9, %v482_v2  ;;  %v484_v7 = vld [vmem:[%s1937_s26 + $0x990] sm:$0xff]  ;;  %v485_v10 = vld [vmem:[%s1937_s26 + $0x998] sm:$0xff]  ;;  %v932_v12 = vadd.f32 %v1954_v11, %v483_v6 }
  0xde   : > { %1339 = vst [vmem:[%s1977_s20 + $0x8c0] sm:$0xff] %v907_v21  ;;  %1340 = vst [vmem:[%s1977_s20 + $0x8c8] sm:$0xff] %v908_v25  ;;  %v933_v13 = vadd.f32 %v1949_v8, %v484_v7  ;;  %v934_v14 = vadd.f32 %v1951_v9, %v485_v10  ;;  %v486_v15 = vld [vmem:[%s1937_s26 + $0x9a0] sm:$0xff]  ;;  %v487_v16 = vld [vmem:[%s1937_s26 + $0x9a8] sm:$0xff] }
  0xdf   : > { %1341 = vst [vmem:[%s1977_s20 + $0x8d0] sm:$0xff] %v909_v26  ;;  %1342 = vst [vmem:[%s1977_s20 + $0x8d8] sm:$0xff] %v910_v27  ;;  %v488_v17 = vld [vmem:[%s1937_s26 + $0x9b0] sm:$0xff]  ;;  %v935_v18 = vadd.f32 %v1954_v11, %v486_v15  ;;  %v936_v19 = vadd.f32 %v1949_v8, %v487_v16  ;;  %v489_v21 = vld [vmem:[%s1937_s26 + $0x9b8] sm:$0xff] }
  0xe0   : > { %1343 = vst [vmem:[%s1977_s20 + $0x8e0] sm:$0xff] %v911_v31  ;;  %1344 = vst [vmem:[%s1977_s20 + $0x8e8] sm:$0xff] %v912_v32  ;;  %v937_v20 = vadd.f32 %v1951_v9, %v488_v17  ;;  %v490_v22 = vld [vmem:[%s1937_s26 + $0x9c0] sm:$0xff]  ;;  %v491_v23 = vld [vmem:[%s1937_s26 + $0x9c8] sm:$0xff]  ;;  %v938_v24 = vadd.f32 %v1954_v11, %v489_v21 }
  0xe1   : > { %1345 = vst [vmem:[%s1977_s20 + $0x8f0] sm:$0xff] %v913_v33  ;;  %1346 = vst [vmem:[%s1977_s20 + $0x8f8] sm:$0xff] %v914_v37  ;;  %v939_v25 = vadd.f32 %v1949_v8, %v490_v22  ;;  %v940_v26 = vadd.f32 %v1951_v9, %v491_v23  ;;  %v492_v27 = vld [vmem:[%s1937_s26 + $0x9d0] sm:$0xff]  ;;  %v493_v28 = vld [vmem:[%s1937_s26 + $0x9d8] sm:$0xff] }
  0xe2   : > { %1347 = vst [vmem:[%s1977_s20 + $0x900] sm:$0xff] %v915_v38  ;;  %1348 = vst [vmem:[%s1977_s20 + $0x908] sm:$0xff] %v916_v39  ;;  %v494_v29 = vld [vmem:[%s1937_s26 + $0x9e0] sm:$0xff]  ;;  %v941_v30 = vadd.f32 %v1954_v11, %v492_v27  ;;  %v942_v31 = vadd.f32 %v1949_v8, %v493_v28  ;;  %v495_v33 = vld [vmem:[%s1937_s26 + $0x9e8] sm:$0xff] }
  0xe3   : > { %1349 = vst [vmem:[%s1977_s20 + $0x910] sm:$0xff] %v917_v43  ;;  %1350 = vst [vmem:[%s1977_s20 + $0x918] sm:$0xff] %v918_v44  ;;  %v943_v32 = vadd.f32 %v1951_v9, %v494_v29  ;;  %v496_v34 = vld [vmem:[%s1937_s26 + $0x9f0] sm:$0xff]  ;;  %v497_v35 = vld [vmem:[%s1937_s26 + $0x9f8] sm:$0xff]  ;;  %v944_v36 = vadd.f32 %v1954_v11, %v495_v33 }
  0xe4   : > { %1351 = vst [vmem:[%s1977_s20 + $0x920] sm:$0xff] %v919_v45  ;;  %1352 = vst [vmem:[%s1977_s20 + $0x928] sm:$0xff] %v920_v49  ;;  %v945_v37 = vadd.f32 %v1949_v8, %v496_v34  ;;  %v946_v38 = vadd.f32 %v1951_v9, %v497_v35  ;;  %v498_v39 = vld [vmem:[%s1937_s26 + $0xa00] sm:$0xff]  ;;  %v499_v40 = vld [vmem:[%s1937_s26 + $0xa08] sm:$0xff] }
  0xe5   : > { %1353 = vst [vmem:[%s1977_s20 + $0x930] sm:$0xff] %v921_v50  ;;  %1354 = vst [vmem:[%s1977_s20 + $0x938] sm:$0xff] %v922_v51  ;;  %v500_v41 = vld [vmem:[%s1937_s26 + $0xa10] sm:$0xff]  ;;  %v947_v42 = vadd.f32 %v1954_v11, %v498_v39  ;;  %v948_v43 = vadd.f32 %v1949_v8, %v499_v40  ;;  %v501_v45 = vld [vmem:[%s1937_s26 + $0xa18] sm:$0xff] }
  0xe6   : > { %1355 = vst [vmem:[%s1977_s20 + $0x940] sm:$0xff] %v923_v55  ;;  %1356 = vst [vmem:[%s1977_s20 + $0x948] sm:$0xff] %v924_v56  ;;  %v949_v44 = vadd.f32 %v1951_v9, %v500_v41  ;;  %v502_v46 = vld [vmem:[%s1937_s26 + $0xa20] sm:$0xff]  ;;  %v503_v47 = vld [vmem:[%s1937_s26 + $0xa28] sm:$0xff]  ;;  %v950_v48 = vadd.f32 %v1954_v11, %v501_v45 }
  0xe7   : > { %1357 = vst [vmem:[%s1977_s20 + $0x950] sm:$0xff] %v925_v57  ;;  %1358 = vst [vmem:[%s1977_s20 + $0x958] sm:$0xff] %v926_v61  ;;  %v951_v49 = vadd.f32 %v1949_v8, %v502_v46  ;;  %v952_v50 = vadd.f32 %v1951_v9, %v503_v47  ;;  %v504_v51 = vld [vmem:[%s1937_s26 + $0xa30] sm:$0xff]  ;;  %v505_v52 = vld [vmem:[%s1937_s26 + $0xa38] sm:$0xff] }
  0xe8   : > { %1359 = vst [vmem:[%s1977_s20 + $0x960] sm:$0xff] %v927_v62  ;;  %1360 = vst [vmem:[%s1977_s20 + $0x968] sm:$0xff] %v928_v63  ;;  %v506_v53 = vld [vmem:[%s1937_s26 + $0xa40] sm:$0xff]  ;;  %v953_v54 = vadd.f32 %v1954_v11, %v504_v51  ;;  %v954_v55 = vadd.f32 %v1949_v8, %v505_v52  ;;  %v507_v57 = vld [vmem:[%s1937_s26 + $0xa48] sm:$0xff] }
  0xe9   : > { %1361 = vst [vmem:[%s1977_s20 + $0x970] sm:$0xff] %v929_v3  ;;  %1362 = vst [vmem:[%s1977_s20 + $0x978] sm:$0xff] %v930_v4  ;;  %v955_v56 = vadd.f32 %v1951_v9, %v506_v53  ;;  %v508_v58 = vld [vmem:[%s1937_s26 + $0xa50] sm:$0xff]  ;;  %v509_v59 = vld [vmem:[%s1937_s26 + $0xa58] sm:$0xff]  ;;  %v956_v60 = vadd.f32 %v1954_v11, %v507_v57 }
  0xea   : > { %1363 = vst [vmem:[%s1977_s20 + $0x980] sm:$0xff] %v931_v5  ;;  %1364 = vst [vmem:[%s1977_s20 + $0x988] sm:$0xff] %v932_v12  ;;  %v957_v61 = vadd.f32 %v1949_v8, %v508_v58  ;;  %v958_v62 = vadd.f32 %v1951_v9, %v509_v59  ;;  %v510_v63 = vld [vmem:[%s1937_s26 + $0xa60] sm:$0xff]  ;;  %v511_v0 = vld [vmem:[%s1937_s26 + $0xa68] sm:$0xff] }
  0xeb   : > { %1365 = vst [vmem:[%s1977_s20 + $0x990] sm:$0xff] %v933_v13  ;;  %1366 = vst [vmem:[%s1977_s20 + $0x998] sm:$0xff] %v934_v14  ;;  %v512_v1 = vld [vmem:[%s1937_s26 + $0xa70] sm:$0xff]  ;;  %v959_v2 = vadd.f32 %v1954_v11, %v510_v63  ;;  %v960_v3 = vadd.f32 %v1949_v8, %v511_v0  ;;  %v513_v5 = vld [vmem:[%s1937_s26 + $0xa78] sm:$0xff] }
  0xec   : > { %1367 = vst [vmem:[%s1977_s20 + $0x9a0] sm:$0xff] %v935_v18  ;;  %1368 = vst [vmem:[%s1977_s20 + $0x9a8] sm:$0xff] %v936_v19  ;;  %v961_v4 = vadd.f32 %v1951_v9, %v512_v1  ;;  %v514_v6 = vld [vmem:[%s1937_s26 + $0xa80] sm:$0xff]  ;;  %v515_v7 = vld [vmem:[%s1937_s26 + $0xa88] sm:$0xff]  ;;  %v962_v10 = vadd.f32 %v1954_v11, %v513_v5 }
  0xed   : > { %1369 = vst [vmem:[%s1977_s20 + $0x9b0] sm:$0xff] %v937_v20  ;;  %1370 = vst [vmem:[%s1977_s20 + $0x9b8] sm:$0xff] %v938_v24  ;;  %v963_v12 = vadd.f32 %v1949_v8, %v514_v6  ;;  %v964_v13 = vadd.f32 %v1951_v9, %v515_v7  ;;  %v516_v14 = vld [vmem:[%s1937_s26 + $0xa90] sm:$0xff]  ;;  %v517_v15 = vld [vmem:[%s1937_s26 + $0xa98] sm:$0xff] }
  0xee   : > { %1371 = vst [vmem:[%s1977_s20 + $0x9c0] sm:$0xff] %v939_v25  ;;  %1372 = vst [vmem:[%s1977_s20 + $0x9c8] sm:$0xff] %v940_v26  ;;  %v518_v16 = vld [vmem:[%s1937_s26 + $0xaa0] sm:$0xff]  ;;  %v965_v17 = vadd.f32 %v1954_v11, %v516_v14  ;;  %v966_v18 = vadd.f32 %v1949_v8, %v517_v15  ;;  %v519_v20 = vld [vmem:[%s1937_s26 + $0xaa8] sm:$0xff] }
  0xef   : > { %1373 = vst [vmem:[%s1977_s20 + $0x9d0] sm:$0xff] %v941_v30  ;;  %1374 = vst [vmem:[%s1977_s20 + $0x9d8] sm:$0xff] %v942_v31  ;;  %v967_v19 = vadd.f32 %v1951_v9, %v518_v16  ;;  %v520_v21 = vld [vmem:[%s1937_s26 + $0xab0] sm:$0xff]  ;;  %v521_v22 = vld [vmem:[%s1937_s26 + $0xab8] sm:$0xff]  ;;  %v968_v23 = vadd.f32 %v1954_v11, %v519_v20 }
  0xf0   : > { %1375 = vst [vmem:[%s1977_s20 + $0x9e0] sm:$0xff] %v943_v32  ;;  %1376 = vst [vmem:[%s1977_s20 + $0x9e8] sm:$0xff] %v944_v36  ;;  %v969_v24 = vadd.f32 %v1949_v8, %v520_v21  ;;  %v970_v25 = vadd.f32 %v1951_v9, %v521_v22  ;;  %v522_v26 = vld [vmem:[%s1937_s26 + $0xac0] sm:$0xff]  ;;  %v523_v27 = vld [vmem:[%s1937_s26 + $0xac8] sm:$0xff] }
  0xf1   : > { %1377 = vst [vmem:[%s1977_s20 + $0x9f0] sm:$0xff] %v945_v37  ;;  %1378 = vst [vmem:[%s1977_s20 + $0x9f8] sm:$0xff] %v946_v38  ;;  %v524_v28 = vld [vmem:[%s1937_s26 + $0xad0] sm:$0xff]  ;;  %v971_v29 = vadd.f32 %v1954_v11, %v522_v26  ;;  %v972_v30 = vadd.f32 %v1949_v8, %v523_v27  ;;  %v525_v32 = vld [vmem:[%s1937_s26 + $0xad8] sm:$0xff] }
  0xf2   : > { %1379 = vst [vmem:[%s1977_s20 + $0xa00] sm:$0xff] %v947_v42  ;;  %1380 = vst [vmem:[%s1977_s20 + $0xa08] sm:$0xff] %v948_v43  ;;  %v973_v31 = vadd.f32 %v1951_v9, %v524_v28  ;;  %v526_v33 = vld [vmem:[%s1937_s26 + $0xae0] sm:$0xff]  ;;  %v527_v34 = vld [vmem:[%s1937_s26 + $0xae8] sm:$0xff]  ;;  %v974_v35 = vadd.f32 %v1954_v11, %v525_v32 }
  0xf3   : > { %1381 = vst [vmem:[%s1977_s20 + $0xa10] sm:$0xff] %v949_v44  ;;  %1382 = vst [vmem:[%s1977_s20 + $0xa18] sm:$0xff] %v950_v48  ;;  %v975_v36 = vadd.f32 %v1949_v8, %v526_v33  ;;  %v976_v37 = vadd.f32 %v1951_v9, %v527_v34  ;;  %v528_v38 = vld [vmem:[%s1937_s26 + $0xaf0] sm:$0xff]  ;;  %v529_v39 = vld [vmem:[%s1937_s26 + $0xaf8] sm:$0xff] }
  0xf4   : > { %1383 = vst [vmem:[%s1977_s20 + $0xa20] sm:$0xff] %v951_v49  ;;  %1384 = vst [vmem:[%s1977_s20 + $0xa28] sm:$0xff] %v952_v50  ;;  %v530_v40 = vld [vmem:[%s1937_s26 + $0xb00] sm:$0xff]  ;;  %v977_v41 = vadd.f32 %v1954_v11, %v528_v38  ;;  %v978_v42 = vadd.f32 %v1949_v8, %v529_v39  ;;  %v531_v44 = vld [vmem:[%s1937_s26 + $0xb08] sm:$0xff] }
  0xf5   : > { %1385 = vst [vmem:[%s1977_s20 + $0xa30] sm:$0xff] %v953_v54  ;;  %1386 = vst [vmem:[%s1977_s20 + $0xa38] sm:$0xff] %v954_v55  ;;  %v979_v43 = vadd.f32 %v1951_v9, %v530_v40  ;;  %v532_v45 = vld [vmem:[%s1937_s26 + $0xb10] sm:$0xff]  ;;  %v533_v46 = vld [vmem:[%s1937_s26 + $0xb18] sm:$0xff]  ;;  %v980_v47 = vadd.f32 %v1954_v11, %v531_v44 }
  0xf6   : > { %1387 = vst [vmem:[%s1977_s20 + $0xa40] sm:$0xff] %v955_v56  ;;  %1388 = vst [vmem:[%s1977_s20 + $0xa48] sm:$0xff] %v956_v60  ;;  %v981_v48 = vadd.f32 %v1949_v8, %v532_v45  ;;  %v982_v49 = vadd.f32 %v1951_v9, %v533_v46  ;;  %v534_v50 = vld [vmem:[%s1937_s26 + $0xb20] sm:$0xff]  ;;  %v535_v51 = vld [vmem:[%s1937_s26 + $0xb28] sm:$0xff] }
  0xf7   : > { %1389 = vst [vmem:[%s1977_s20 + $0xa50] sm:$0xff] %v957_v61  ;;  %1390 = vst [vmem:[%s1977_s20 + $0xa58] sm:$0xff] %v958_v62  ;;  %v536_v52 = vld [vmem:[%s1937_s26 + $0xb30] sm:$0xff]  ;;  %v983_v53 = vadd.f32 %v1954_v11, %v534_v50  ;;  %v984_v54 = vadd.f32 %v1949_v8, %v535_v51  ;;  %v537_v56 = vld [vmem:[%s1937_s26 + $0xb38] sm:$0xff] }
  0xf8   : > { %1391 = vst [vmem:[%s1977_s20 + $0xa60] sm:$0xff] %v959_v2  ;;  %1392 = vst [vmem:[%s1977_s20 + $0xa68] sm:$0xff] %v960_v3  ;;  %v985_v55 = vadd.f32 %v1951_v9, %v536_v52  ;;  %v538_v57 = vld [vmem:[%s1937_s26 + $0xb40] sm:$0xff]  ;;  %v539_v58 = vld [vmem:[%s1937_s26 + $0xb48] sm:$0xff]  ;;  %v986_v59 = vadd.f32 %v1954_v11, %v537_v56 }
  0xf9   : > { %1393 = vst [vmem:[%s1977_s20 + $0xa70] sm:$0xff] %v961_v4  ;;  %1394 = vst [vmem:[%s1977_s20 + $0xa78] sm:$0xff] %v962_v10  ;;  %v987_v60 = vadd.f32 %v1949_v8, %v538_v57  ;;  %v988_v61 = vadd.f32 %v1951_v9, %v539_v58  ;;  %v540_v62 = vld [vmem:[%s1937_s26 + $0xb50] sm:$0xff]  ;;  %v541_v63 = vld [vmem:[%s1937_s26 + $0xb58] sm:$0xff] }
  0xfa   : > { %1395 = vst [vmem:[%s1977_s20 + $0xa80] sm:$0xff] %v963_v12  ;;  %1396 = vst [vmem:[%s1977_s20 + $0xa88] sm:$0xff] %v964_v13  ;;  %v542_v0 = vld [vmem:[%s1937_s26 + $0xb60] sm:$0xff]  ;;  %v989_v1 = vadd.f32 %v1954_v11, %v540_v62  ;;  %v990_v2 = vadd.f32 %v1949_v8, %v541_v63  ;;  %v543_v4 = vld [vmem:[%s1937_s26 + $0xb68] sm:$0xff] }
  0xfb   : > { %1397 = vst [vmem:[%s1977_s20 + $0xa90] sm:$0xff] %v965_v17  ;;  %1398 = vst [vmem:[%s1977_s20 + $0xa98] sm:$0xff] %v966_v18  ;;  %v991_v3 = vadd.f32 %v1951_v9, %v542_v0  ;;  %v544_v5 = vld [vmem:[%s1937_s26 + $0xb70] sm:$0xff]  ;;  %v545_v6 = vld [vmem:[%s1937_s26 + $0xb78] sm:$0xff]  ;;  %v992_v7 = vadd.f32 %v1954_v11, %v543_v4 }
  0xfc   : > { %1399 = vst [vmem:[%s1977_s20 + $0xaa0] sm:$0xff] %v967_v19  ;;  %1400 = vst [vmem:[%s1977_s20 + $0xaa8] sm:$0xff] %v968_v23  ;;  %v993_v10 = vadd.f32 %v1949_v8, %v544_v5  ;;  %v994_v12 = vadd.f32 %v1951_v9, %v545_v6  ;;  %v546_v13 = vld [vmem:[%s1937_s26 + $0xb80] sm:$0xff]  ;;  %v547_v14 = vld [vmem:[%s1937_s26 + $0xb88] sm:$0xff] }
  0xfd   : > { %1401 = vst [vmem:[%s1977_s20 + $0xab0] sm:$0xff] %v969_v24  ;;  %1402 = vst [vmem:[%s1977_s20 + $0xab8] sm:$0xff] %v970_v25  ;;  %v548_v15 = vld [vmem:[%s1937_s26 + $0xb90] sm:$0xff]  ;;  %v995_v16 = vadd.f32 %v1954_v11, %v546_v13  ;;  %v996_v17 = vadd.f32 %v1949_v8, %v547_v14  ;;  %v549_v19 = vld [vmem:[%s1937_s26 + $0xb98] sm:$0xff] }
  0xfe   : > { %1403 = vst [vmem:[%s1977_s20 + $0xac0] sm:$0xff] %v971_v29  ;;  %1404 = vst [vmem:[%s1977_s20 + $0xac8] sm:$0xff] %v972_v30  ;;  %v997_v18 = vadd.f32 %v1951_v9, %v548_v15  ;;  %v550_v20 = vld [vmem:[%s1937_s26 + $0xba0] sm:$0xff]  ;;  %v551_v21 = vld [vmem:[%s1937_s26 + $0xba8] sm:$0xff]  ;;  %v998_v22 = vadd.f32 %v1954_v11, %v549_v19 }
  0xff   : > { %1405 = vst [vmem:[%s1977_s20 + $0xad0] sm:$0xff] %v973_v31  ;;  %1406 = vst [vmem:[%s1977_s20 + $0xad8] sm:$0xff] %v974_v35  ;;  %v999_v23 = vadd.f32 %v1949_v8, %v550_v20  ;;  %v1000_v24 = vadd.f32 %v1951_v9, %v551_v21  ;;  %v552_v25 = vld [vmem:[%s1937_s26 + $0xbb0] sm:$0xff]  ;;  %v553_v26 = vld [vmem:[%s1937_s26 + $0xbb8] sm:$0xff] }
 0x100   : > { %1407 = vst [vmem:[%s1977_s20 + $0xae0] sm:$0xff] %v975_v36  ;;  %1408 = vst [vmem:[%s1977_s20 + $0xae8] sm:$0xff] %v976_v37  ;;  %v554_v27 = vld [vmem:[%s1937_s26 + $0xbc0] sm:$0xff]  ;;  %v1001_v28 = vadd.f32 %v1954_v11, %v552_v25  ;;  %v1002_v29 = vadd.f32 %v1949_v8, %v553_v26  ;;  %v555_v31 = vld [vmem:[%s1937_s26 + $0xbc8] sm:$0xff] }
 0x101   : > { %1409 = vst [vmem:[%s1977_s20 + $0xaf0] sm:$0xff] %v977_v41  ;;  %1410 = vst [vmem:[%s1977_s20 + $0xaf8] sm:$0xff] %v978_v42  ;;  %v1003_v30 = vadd.f32 %v1951_v9, %v554_v27  ;;  %v556_v32 = vld [vmem:[%s1937_s26 + $0xbd0] sm:$0xff]  ;;  %v557_v33 = vld [vmem:[%s1937_s26 + $0xbd8] sm:$0xff]  ;;  %v1004_v34 = vadd.f32 %v1954_v11, %v555_v31 }
 0x102   : > { %1411 = vst [vmem:[%s1977_s20 + $0xb00] sm:$0xff] %v979_v43  ;;  %1412 = vst [vmem:[%s1977_s20 + $0xb08] sm:$0xff] %v980_v47  ;;  %v1005_v35 = vadd.f32 %v1949_v8, %v556_v32  ;;  %v1006_v36 = vadd.f32 %v1951_v9, %v557_v33  ;;  %v558_v37 = vld [vmem:[%s1937_s26 + $0xbe0] sm:$0xff]  ;;  %v559_v38 = vld [vmem:[%s1937_s26 + $0xbe8] sm:$0xff] }
 0x103   : > { %1413 = vst [vmem:[%s1977_s20 + $0xb10] sm:$0xff] %v981_v48  ;;  %1414 = vst [vmem:[%s1977_s20 + $0xb18] sm:$0xff] %v982_v49  ;;  %v560_v39 = vld [vmem:[%s1937_s26 + $0xbf0] sm:$0xff]  ;;  %v1007_v40 = vadd.f32 %v1954_v11, %v558_v37  ;;  %v1008_v41 = vadd.f32 %v1949_v8, %v559_v38  ;;  %v561_v43 = vld [vmem:[%s1937_s26 + $0xbf8] sm:$0xff] }
 0x104   : > { %1415 = vst [vmem:[%s1977_s20 + $0xb20] sm:$0xff] %v983_v53  ;;  %1416 = vst [vmem:[%s1977_s20 + $0xb28] sm:$0xff] %v984_v54  ;;  %v1009_v42 = vadd.f32 %v1951_v9, %v560_v39  ;;  %v562_v44 = vld [vmem:[%s1937_s26 + $0xc00] sm:$0xff]  ;;  %v563_v45 = vld [vmem:[%s1937_s26 + $0xc08] sm:$0xff]  ;;  %v1010_v46 = vadd.f32 %v1954_v11, %v561_v43 }
 0x105   : > { %1417 = vst [vmem:[%s1977_s20 + $0xb30] sm:$0xff] %v985_v55  ;;  %1418 = vst [vmem:[%s1977_s20 + $0xb38] sm:$0xff] %v986_v59  ;;  %v1011_v47 = vadd.f32 %v1949_v8, %v562_v44  ;;  %v1012_v48 = vadd.f32 %v1951_v9, %v563_v45  ;;  %v564_v49 = vld [vmem:[%s1937_s26 + $0xc10] sm:$0xff]  ;;  %v565_v50 = vld [vmem:[%s1937_s26 + $0xc18] sm:$0xff] }
 0x106   : > { %1419 = vst [vmem:[%s1977_s20 + $0xb40] sm:$0xff] %v987_v60  ;;  %1420 = vst [vmem:[%s1977_s20 + $0xb48] sm:$0xff] %v988_v61  ;;  %v566_v51 = vld [vmem:[%s1937_s26 + $0xc20] sm:$0xff]  ;;  %v1013_v52 = vadd.f32 %v1954_v11, %v564_v49  ;;  %v1014_v53 = vadd.f32 %v1949_v8, %v565_v50  ;;  %v567_v55 = vld [vmem:[%s1937_s26 + $0xc28] sm:$0xff] }
 0x107   : > { %1421 = vst [vmem:[%s1977_s20 + $0xb50] sm:$0xff] %v989_v1  ;;  %1422 = vst [vmem:[%s1977_s20 + $0xb58] sm:$0xff] %v990_v2  ;;  %v1015_v54 = vadd.f32 %v1951_v9, %v566_v51  ;;  %v568_v56 = vld [vmem:[%s1937_s26 + $0xc30] sm:$0xff]  ;;  %v569_v57 = vld [vmem:[%s1937_s26 + $0xc38] sm:$0xff]  ;;  %v1016_v58 = vadd.f32 %v1954_v11, %v567_v55 }
 0x108   : > { %1423 = vst [vmem:[%s1977_s20 + $0xb60] sm:$0xff] %v991_v3  ;;  %1424 = vst [vmem:[%s1977_s20 + $0xb68] sm:$0xff] %v992_v7  ;;  %v1017_v59 = vadd.f32 %v1949_v8, %v568_v56  ;;  %v1018_v60 = vadd.f32 %v1951_v9, %v569_v57  ;;  %v570_v61 = vld [vmem:[%s1937_s26 + $0xc40] sm:$0xff]  ;;  %v571_v62 = vld [vmem:[%s1937_s26 + $0xc48] sm:$0xff] }
 0x109   : > { %1425 = vst [vmem:[%s1977_s20 + $0xb70] sm:$0xff] %v993_v10  ;;  %1426 = vst [vmem:[%s1977_s20 + $0xb78] sm:$0xff] %v994_v12  ;;  %v572_v63 = vld [vmem:[%s1937_s26 + $0xc50] sm:$0xff]  ;;  %v1019_v0 = vadd.f32 %v1954_v11, %v570_v61  ;;  %v1020_v1 = vadd.f32 %v1949_v8, %v571_v62  ;;  %v573_v3 = vld [vmem:[%s1937_s26 + $0xc58] sm:$0xff] }
 0x10a   : > { %1427 = vst [vmem:[%s1977_s20 + $0xb80] sm:$0xff] %v995_v16  ;;  %1428 = vst [vmem:[%s1977_s20 + $0xb88] sm:$0xff] %v996_v17  ;;  %v1021_v2 = vadd.f32 %v1951_v9, %v572_v63  ;;  %v574_v4 = vld [vmem:[%s1937_s26 + $0xc60] sm:$0xff]  ;;  %v575_v5 = vld [vmem:[%s1937_s26 + $0xc68] sm:$0xff]  ;;  %v1022_v6 = vadd.f32 %v1954_v11, %v573_v3 }
 0x10b   : > { %1429 = vst [vmem:[%s1977_s20 + $0xb90] sm:$0xff] %v997_v18  ;;  %1430 = vst [vmem:[%s1977_s20 + $0xb98] sm:$0xff] %v998_v22  ;;  %v1023_v7 = vadd.f32 %v1949_v8, %v574_v4  ;;  %v1024_v10 = vadd.f32 %v1951_v9, %v575_v5  ;;  %v576_v12 = vld [vmem:[%s1937_s26 + $0xc70] sm:$0xff]  ;;  %v577_v13 = vld [vmem:[%s1937_s26 + $0xc78] sm:$0xff] }
 0x10c   : > { %1431 = vst [vmem:[%s1977_s20 + $0xba0] sm:$0xff] %v999_v23  ;;  %1432 = vst [vmem:[%s1977_s20 + $0xba8] sm:$0xff] %v1000_v24  ;;  %v578_v14 = vld [vmem:[%s1937_s26 + $0xc80] sm:$0xff]  ;;  %v1025_v15 = vadd.f32 %v1954_v11, %v576_v12  ;;  %v1026_v16 = vadd.f32 %v1949_v8, %v577_v13  ;;  %v579_v18 = vld [vmem:[%s1937_s26 + $0xc88] sm:$0xff] }
 0x10d   : > { %1433 = vst [vmem:[%s1977_s20 + $0xbb0] sm:$0xff] %v1001_v28  ;;  %1434 = vst [vmem:[%s1977_s20 + $0xbb8] sm:$0xff] %v1002_v29  ;;  %v1027_v17 = vadd.f32 %v1951_v9, %v578_v14  ;;  %v580_v19 = vld [vmem:[%s1937_s26 + $0xc90] sm:$0xff]  ;;  %v581_v20 = vld [vmem:[%s1937_s26 + $0xc98] sm:$0xff]  ;;  %v1028_v21 = vadd.f32 %v1954_v11, %v579_v18 }
 0x10e   : > { %1435 = vst [vmem:[%s1977_s20 + $0xbc0] sm:$0xff] %v1003_v30  ;;  %1436 = vst [vmem:[%s1977_s20 + $0xbc8] sm:$0xff] %v1004_v34  ;;  %v1029_v22 = vadd.f32 %v1949_v8, %v580_v19  ;;  %v1030_v23 = vadd.f32 %v1951_v9, %v581_v20  ;;  %v582_v24 = vld [vmem:[%s1937_s26 + $0xca0] sm:$0xff]  ;;  %v583_v25 = vld [vmem:[%s1937_s26 + $0xca8] sm:$0xff] }
 0x10f   : > { %1437 = vst [vmem:[%s1977_s20 + $0xbd0] sm:$0xff] %v1005_v35  ;;  %1438 = vst [vmem:[%s1977_s20 + $0xbd8] sm:$0xff] %v1006_v36  ;;  %v584_v26 = vld [vmem:[%s1937_s26 + $0xcb0] sm:$0xff]  ;;  %v1031_v27 = vadd.f32 %v1954_v11, %v582_v24  ;;  %v1032_v28 = vadd.f32 %v1949_v8, %v583_v25  ;;  %v585_v30 = vld [vmem:[%s1937_s26 + $0xcb8] sm:$0xff] }
 0x110   : > { %1439 = vst [vmem:[%s1977_s20 + $0xbe0] sm:$0xff] %v1007_v40  ;;  %1440 = vst [vmem:[%s1977_s20 + $0xbe8] sm:$0xff] %v1008_v41  ;;  %v1033_v29 = vadd.f32 %v1951_v9, %v584_v26  ;;  %v586_v31 = vld [vmem:[%s1937_s26 + $0xcc0] sm:$0xff]  ;;  %v587_v32 = vld [vmem:[%s1937_s26 + $0xcc8] sm:$0xff]  ;;  %v1034_v33 = vadd.f32 %v1954_v11, %v585_v30 }
 0x111   : > { %1441 = vst [vmem:[%s1977_s20 + $0xbf0] sm:$0xff] %v1009_v42  ;;  %1442 = vst [vmem:[%s1977_s20 + $0xbf8] sm:$0xff] %v1010_v46  ;;  %v1035_v34 = vadd.f32 %v1949_v8, %v586_v31  ;;  %v1036_v35 = vadd.f32 %v1951_v9, %v587_v32  ;;  %v588_v36 = vld [vmem:[%s1937_s26 + $0xcd0] sm:$0xff]  ;;  %v589_v37 = vld [vmem:[%s1937_s26 + $0xcd8] sm:$0xff] }
 0x112   : > { %1443 = vst [vmem:[%s1977_s20 + $0xc00] sm:$0xff] %v1011_v47  ;;  %1444 = vst [vmem:[%s1977_s20 + $0xc08] sm:$0xff] %v1012_v48  ;;  %v590_v38 = vld [vmem:[%s1937_s26 + $0xce0] sm:$0xff]  ;;  %v1037_v39 = vadd.f32 %v1954_v11, %v588_v36  ;;  %v1038_v40 = vadd.f32 %v1949_v8, %v589_v37  ;;  %v591_v42 = vld [vmem:[%s1937_s26 + $0xce8] sm:$0xff] }
 0x113   : > { %1445 = vst [vmem:[%s1977_s20 + $0xc10] sm:$0xff] %v1013_v52  ;;  %1446 = vst [vmem:[%s1977_s20 + $0xc18] sm:$0xff] %v1014_v53  ;;  %v1039_v41 = vadd.f32 %v1951_v9, %v590_v38  ;;  %v592_v43 = vld [vmem:[%s1937_s26 + $0xcf0] sm:$0xff]  ;;  %v593_v44 = vld [vmem:[%s1937_s26 + $0xcf8] sm:$0xff]  ;;  %v1040_v45 = vadd.f32 %v1954_v11, %v591_v42 }
 0x114   : > { %1447 = vst [vmem:[%s1977_s20 + $0xc20] sm:$0xff] %v1015_v54  ;;  %1448 = vst [vmem:[%s1977_s20 + $0xc28] sm:$0xff] %v1016_v58  ;;  %v1041_v46 = vadd.f32 %v1949_v8, %v592_v43  ;;  %v1042_v47 = vadd.f32 %v1951_v9, %v593_v44  ;;  %v594_v48 = vld [vmem:[%s1937_s26 + $0xd00] sm:$0xff]  ;;  %v595_v49 = vld [vmem:[%s1937_s26 + $0xd08] sm:$0xff] }
 0x115   : > { %1449 = vst [vmem:[%s1977_s20 + $0xc30] sm:$0xff] %v1017_v59  ;;  %1450 = vst [vmem:[%s1977_s20 + $0xc38] sm:$0xff] %v1018_v60  ;;  %v596_v50 = vld [vmem:[%s1937_s26 + $0xd10] sm:$0xff]  ;;  %v1043_v51 = vadd.f32 %v1954_v11, %v594_v48  ;;  %v1044_v52 = vadd.f32 %v1949_v8, %v595_v49  ;;  %v597_v54 = vld [vmem:[%s1937_s26 + $0xd18] sm:$0xff] }
 0x116   : > { %1451 = vst [vmem:[%s1977_s20 + $0xc40] sm:$0xff] %v1019_v0  ;;  %1452 = vst [vmem:[%s1977_s20 + $0xc48] sm:$0xff] %v1020_v1  ;;  %v1045_v53 = vadd.f32 %v1951_v9, %v596_v50  ;;  %v598_v55 = vld [vmem:[%s1937_s26 + $0xd20] sm:$0xff]  ;;  %v599_v56 = vld [vmem:[%s1937_s26 + $0xd28] sm:$0xff]  ;;  %v1046_v57 = vadd.f32 %v1954_v11, %v597_v54 }
 0x117   : > { %1453 = vst [vmem:[%s1977_s20 + $0xc50] sm:$0xff] %v1021_v2  ;;  %1454 = vst [vmem:[%s1977_s20 + $0xc58] sm:$0xff] %v1022_v6  ;;  %v1047_v58 = vadd.f32 %v1949_v8, %v598_v55  ;;  %v1048_v59 = vadd.f32 %v1951_v9, %v599_v56  ;;  %v600_v60 = vld [vmem:[%s1937_s26 + $0xd30] sm:$0xff]  ;;  %v601_v61 = vld [vmem:[%s1937_s26 + $0xd38] sm:$0xff] }
 0x118   : > { %1455 = vst [vmem:[%s1977_s20 + $0xc60] sm:$0xff] %v1023_v7  ;;  %1456 = vst [vmem:[%s1977_s20 + $0xc68] sm:$0xff] %v1024_v10  ;;  %v602_v62 = vld [vmem:[%s1937_s26 + $0xd40] sm:$0xff]  ;;  %v1049_v63 = vadd.f32 %v1954_v11, %v600_v60  ;;  %v1050_v0 = vadd.f32 %v1949_v8, %v601_v61  ;;  %v603_v2 = vld [vmem:[%s1937_s26 + $0xd48] sm:$0xff] }
 0x119   : > { %1457 = vst [vmem:[%s1977_s20 + $0xc70] sm:$0xff] %v1025_v15  ;;  %1458 = vst [vmem:[%s1977_s20 + $0xc78] sm:$0xff] %v1026_v16  ;;  %v1051_v1 = vadd.f32 %v1951_v9, %v602_v62  ;;  %v604_v3 = vld [vmem:[%s1937_s26 + $0xd50] sm:$0xff]  ;;  %v605_v4 = vld [vmem:[%s1937_s26 + $0xd58] sm:$0xff]  ;;  %v1052_v5 = vadd.f32 %v1954_v11, %v603_v2 }
 0x11a   : > { %1459 = vst [vmem:[%s1977_s20 + $0xc80] sm:$0xff] %v1027_v17  ;;  %1460 = vst [vmem:[%s1977_s20 + $0xc88] sm:$0xff] %v1028_v21  ;;  %v1053_v6 = vadd.f32 %v1949_v8, %v604_v3  ;;  %v1054_v7 = vadd.f32 %v1951_v9, %v605_v4  ;;  %v606_v10 = vld [vmem:[%s1937_s26 + $0xd60] sm:$0xff]  ;;  %v607_v12 = vld [vmem:[%s1937_s26 + $0xd68] sm:$0xff] }
 0x11b   : > { %1461 = vst [vmem:[%s1977_s20 + $0xc90] sm:$0xff] %v1029_v22  ;;  %1462 = vst [vmem:[%s1977_s20 + $0xc98] sm:$0xff] %v1030_v23  ;;  %v608_v13 = vld [vmem:[%s1937_s26 + $0xd70] sm:$0xff]  ;;  %v1055_v14 = vadd.f32 %v1954_v11, %v606_v10  ;;  %v1056_v15 = vadd.f32 %v1949_v8, %v607_v12  ;;  %v609_v17 = vld [vmem:[%s1937_s26 + $0xd78] sm:$0xff] }
 0x11c   : > { %1463 = vst [vmem:[%s1977_s20 + $0xca0] sm:$0xff] %v1031_v27  ;;  %1464 = vst [vmem:[%s1977_s20 + $0xca8] sm:$0xff] %v1032_v28  ;;  %v1057_v16 = vadd.f32 %v1951_v9, %v608_v13  ;;  %v1058_v8 = vadd.f32 %v1954_v11, %v609_v17 }
 0x11d   : > { %1465 = vst [vmem:[%s1977_s20 + $0xcb0] sm:$0xff] %v1033_v29  ;;  %1466 = vst [vmem:[%s1977_s20 + $0xcb8] sm:$0xff] %v1034_v33 }
 0x11e   : > { %1467 = vst [vmem:[%s1977_s20 + $0xcc0] sm:$0xff] %v1035_v34  ;;  %1468 = vst [vmem:[%s1977_s20 + $0xcc8] sm:$0xff] %v1036_v35 }
 0x11f   : > { %1469 = vst [vmem:[%s1977_s20 + $0xcd0] sm:$0xff] %v1037_v39  ;;  %1470 = vst [vmem:[%s1977_s20 + $0xcd8] sm:$0xff] %v1038_v40 }
 0x120   : > { %1471 = vst [vmem:[%s1977_s20 + $0xce0] sm:$0xff] %v1039_v41  ;;  %1472 = vst [vmem:[%s1977_s20 + $0xce8] sm:$0xff] %v1040_v45 }
 0x121   : > { %1473 = vst [vmem:[%s1977_s20 + $0xcf0] sm:$0xff] %v1041_v46  ;;  %1474 = vst [vmem:[%s1977_s20 + $0xcf8] sm:$0xff] %v1042_v47 }
 0x122   : > { %1475 = vst [vmem:[%s1977_s20 + $0xd00] sm:$0xff] %v1043_v51  ;;  %1476 = vst [vmem:[%s1977_s20 + $0xd08] sm:$0xff] %v1044_v52 }
 0x123   : > { %1477 = vst [vmem:[%s1977_s20 + $0xd10] sm:$0xff] %v1045_v53  ;;  %1478 = vst [vmem:[%s1977_s20 + $0xd18] sm:$0xff] %v1046_v57 }
 0x124   : > { %1479 = vst [vmem:[%s1977_s20 + $0xd20] sm:$0xff] %v1047_v58  ;;  %1480 = vst [vmem:[%s1977_s20 + $0xd28] sm:$0xff] %v1048_v59 }
 0x125   : > { %1481 = vst [vmem:[%s1977_s20 + $0xd30] sm:$0xff] %v1049_v63  ;;  %1482 = vst [vmem:[%s1977_s20 + $0xd38] sm:$0xff] %v1050_v0 }
 0x126   : > { %1483 = vst [vmem:[%s1977_s20 + $0xd40] sm:$0xff] %v1051_v1  ;;  %1484 = vst [vmem:[%s1977_s20 + $0xd48] sm:$0xff] %v1052_v5 }
 0x127   : > { %1485 = vst [vmem:[%s1977_s20 + $0xd50] sm:$0xff] %v1053_v6  ;;  %1486 = vst [vmem:[%s1977_s20 + $0xd58] sm:$0xff] %v1054_v7 }
 0x128   : > { %1487 = vst [vmem:[%s1977_s20 + $0xd60] sm:$0xff] %v1055_v14  ;;  %1488 = vst [vmem:[%s1977_s20 + $0xd68] sm:$0xff] %v1056_v15 }
 0x129   : > { %1489 = vst [vmem:[%s1977_s20 + $0xd70] sm:$0xff] %v1057_v16  ;;  %1490 = vst [vmem:[%s1977_s20 + $0xd78] sm:$0xff] %v1058_v8 }
 0x12a   : > { %1733 = shalt.err (!%p1730_p1)
}
 0x12b   : > { %s1734_s4 = scalar_lea.hbm %s3252_s19, 55296  ;;  %s1738_s7 = scalar_lea.hbm %s3306_s2, 221184 }
 0x12c   : > { %p1735_p4 = scmp.ne.s32.totalorder %s3252_s19, %s1734_s4  ;;  %p1739_p6 = scmp.lt.s32.totalorder %s3252_s19, %s3306_s2 }
 0x12d   : > { %p1740_p13 = scmp.lt.s32.totalorder %s1738_s7, %s1734_s4 }
 0x12e   : > { %p1736_p11 = pnand %p1735_p4, %p3322_p2 }
 0x12f   : > { %p1741_p3 = por %p1740_p13, %p1739_p6 }
 0x130   : > { %p1737_p5 = pneg %p1736_p11 }
 0x132   : > { %p1742_p12 = pnand %p1741_p3, %p1737_p5 }
 0x134   : > { %1745 = shalt.err (!%p1742_p12)
}
 0x135   : > { %s1795_s25 = smov 384   ;;  %s1796_s26 = smov 24  }
 0x136   : > { %1609 = dma.vmem_to_hbm [thread:$0]  (%p3322_p2), %s3254_s27, 55296, %s3252_s19, %s1492_s13, %s1795_s25, %s1795_s25, %s1796_s26  }
 0x137 PF: > { %p1628_p0 = scmp.ge.s32.totalorder %s1788_s12, 2  ;;  %s1521_s20 = sand.u32 1, %s1776_s9  }
 0x138   : > { %p3323_p7 = scmp.ne.s32.totalorder %s3314_s22, 0  ;;  %s1522_s23 = scalar_lea.sflag [#allocation4], %s1521_s20 }
 0x13a   : > { %p1620_p8 = pnand %p1628_p0, %p3323_p7 }
 0x13c   : > { %p1621_p9 = pneg %p1620_p8 }
 0x13e   : > { %1771 = dma.done.wait (%p1621_p9), %s1522_s23, 55296  }
 0x13f   : > { %1773 = vsyncadd (%p1621_p9), %s1522_s23, 4294912000  ;;  %p16_p10 = scmp.ge.s32.totalorder %s1837_s15, 6   ;;  %s3324_s9 = smov %s1780_s10 }
 0x140   : > { %s3325_s10 = smov %s1784_s11  ;;  %s3326_s11 = smov %s1849_s18 }
 0x141   : > { %s3327_s12 = smov %s1837_s15  ;;  %18 = sbr.rel (!%p16_p10) target bundleno = 6 (0x6), region = 77 }
 0x146   :  { %1527 = vsyncpa [#allocation3], 1 }
 0x147   :  { %1529 = vsyncpa [#allocation3 + $0x1], 1 }
 0x148   :  { %1530 = vsyncpa [#allocation6], 1 }
 0x149   :  { %1531 = vsyncpa [#allocation4], 1 }
 0x14a   :  { %1533 = vsyncpa [#allocation4 + $0x1], 1 }

</bundles_post_ra>
